<compile_context>
chip_gen: v6e
topology: v6e:2x2x1
jax: 0.10.0
libtpu: 0.0.40
codegen_flags: <defaults>
</compile_context>

<pallas_src>
import functools

import jax
import jax.numpy as jnp
import numpy as np
from jax.experimental import pallas as pl
from jax.experimental.pallas import tpu as pltpu

_EPS = 1e-12              # matches torch.nn.functional.normalize default eps
_EPS2 = _EPS * _EPS       # x * rsqrt(max(|x|^2, eps^2)) == x / max(|x|, eps)


def _local_corr_kernel(ref_ref, nbrp_ref, out_ref, *, pad, k):
    # ref_ref : (C, TR, W)          current (batch, row-block) tile of ref
    # nbrp_ref: (C, H+2p, W+2p)     full reflect-padded nbr image of the current batch
    # out_ref : (C, TR, W)
    c, tr, w = ref_ref.shape
    halo = tr + 2 * pad

    ri = pl.program_id(1)
    row0 = pl.multiple_of(ri * tr, tr)        # sublane-aligned start of this row block

    # --- normalize the ref tile over channels (C on separate vregs -> VPU-only reduce)
    r = ref_ref[...].astype(jnp.float32)
    r = r * jax.lax.rsqrt(jnp.maximum(jnp.sum(r * r, axis=0, keepdims=True), _EPS2))

    # --- load the row window (tile rows + halo) of the padded nbr and normalize each
    #     pixel ONCE; the k*k taps below are shifted (static) slices of this window.
    win = nbrp_ref[:, pl.ds(row0, halo), :].astype(jnp.float32)       # (C, TR+2p, W+2p)
    win = win * jax.lax.rsqrt(
        jnp.maximum(jnp.sum(win * win, axis=0, keepdims=True), _EPS2))

    # --- hoist the k lane-shifted column windows ONCE (a dx slice starts at a
    #     misaligned lane offset -> cross-lane relayout on the XLU); the per-tap dy
    #     slices below are cheap sublane slices of these hoisted windows.
    cols = [win[:, :, dx:dx + w] for dx in range(k)]                  # each (C, halo, W)

    # --- single fused pass over the k*k taps: cosine similarity, exp, and the
    #     (unnormalized) weighted aggregation.  No max-subtraction: the logits are
    #     cosine similarities in [-1, 1], so exp(s) is bounded in [1/e, e].
    acc = None                                                        # (C, TR, W)
    den = None                                                        # (TR, W)
    for dy in range(k):
        for dx in range(k):
            tap = cols[dx][:, dy:dy + tr, :]                          # (C, TR, W)
            e = jnp.exp(jnp.sum(r * tap, axis=0))                     # (TR, W), EUP exp
            if acc is None:                                           # init from tap 0
                acc = e[None, :, :] * tap
                den = e
            else:
                acc = acc + e[None, :, :] * tap
                den = den + e

    # --- deferred softmax normalization: one reciprocal + C multiplies at the end.
    inv_den = pl.reciprocal(den, approx=True)                         # EUP slot
    out_ref[...] = (acc * inv_den[None, :, :]).astype(out_ref.dtype)


def _pick_row_tile(h, w, batch, target_pixels):
    """Largest multiple-of-8 divisor of h whose tile has <= target_pixels pixels
    (falls back to the full height); tries to keep >= 2 total grid steps (v7x)."""
    divs = [d for d in range(8, h, 8) if h % d == 0]
    if h % 8 == 0:
        divs.append(h)
    if not divs:
        return h                      # h not a multiple of 8: one full-height block
    fitting = [d for d in divs if d * w <= target_pixels] or [min(divs)]
    tr = max(fitting)
    if batch * (h // tr) < 2:         # keep both v7x TensorCores busy
        smaller = [d for d in divs if d < tr]
        if smaller:
            tr = max(smaller)
    return tr


@functools.lru_cache(maxsize=1)
def _vmem_limit_bytes():
    """Generation-aware VMEM cap: ~3/4 of physical (48 MiB on v7x, 96 MiB on v5e/v6e)."""
    try:
        cap = int(pltpu.get_tpu_info().vmem_capacity_bytes)
    except Exception:                 # query unavailable: assume the smallest (v7x) VMEM
        cap = 64 * 1024 * 1024
    return (cap * 3) // 4


def local_corr(nbr, ref, nbr_size=3, target_tile_pixels=8192):
    """nbr, ref: (b, c, h, w) arrays (NCHW, like the PyTorch module). Returns (b, c, h, w).
    Inputs may be float32 or bfloat16; compute is f32 inside the kernel."""
    assert nbr_size % 2 == 1, "nbr_size must be odd (matches the PyTorch module)"
    b, c, h, w = ref.shape
    k = nbr_size
    pad = k // 2

    # Host-side glue is only the (cheap) reflect pad; the k*k unfold happens in-kernel.
    nbr_pad = jnp.pad(nbr, ((0, 0), (0, 0), (pad, pad), (pad, pad)), mode="reflect")

    # Lane-dense output blocks: pad W up to a multiple of 128 when W >= 128 so every
    # vector store is an unmasked full-lane vst.  The zero columns produce finite
    # garbage (eps-guarded norms) and are sliced off below; valid columns only ever
    # read genuine reflect-padded nbr values.
    w_pad = (-w) % 128 if (w >= 128 and w % 128 != 0) else 0
    if w_pad:
        ref_in = jnp.pad(ref, ((0, 0), (0, 0), (0, 0), (0, w_pad)))
        nbr_pad = jnp.pad(nbr_pad, ((0, 0), (0, 0), (0, 0), (0, w_pad)))
    else:
        ref_in = ref
    wk = w + w_pad
    hp, wp = h + 2 * pad, wk + 2 * pad

    tr = _pick_row_tile(h, wk, b, target_tile_pixels)
    grid = (b, h // tr)

    # Megacore: shard the batch axis when possible so each TensorCore holds/DMAs only
    # its own per-batch nbr image; otherwise fall back to sharding rows.
    dims = ("parallel", "arbitrary") if b >= 2 else ("arbitrary", "parallel")

    def _build(single_buffer_nbr):
        nbr_kwargs = {}
        if single_buffer_nbr:
            # The nbr block index depends only on bi, so it is DMA'd once per batch and
            # revisited across row blocks; double-buffering it only doubles the largest
            # VMEM allocation, so request a single buffer.
            nbr_kwargs["pipeline_mode"] = pl.Buffered(1)
        return pl.pallas_call(
            functools.partial(_local_corr_kernel, pad=pad, k=k),
            out_shape=jax.ShapeDtypeStruct((b, c, h, wk), ref.dtype),
            grid=grid,
            in_specs=[
                # ref: one row-block tile per grid step
                pl.BlockSpec((None, c, tr, wk), lambda bi, ri: (bi, 0, ri, 0)),
                # padded nbr: full image of the current batch
                pl.BlockSpec((None, c, hp, wp), lambda bi, ri: (bi, 0, 0, 0),
                             **nbr_kwargs),
            ],
            out_specs=pl.BlockSpec((None, c, tr, wk), lambda bi, ri: (bi, 0, ri, 0)),
            compiler_params=pltpu.CompilerParams(
                dimension_semantics=dims,
                vmem_limit_bytes=_vmem_limit_bytes(),
            ),
        )

    try:
        out = _build(True)(ref_in, nbr_pad)
    except Exception:
        # pipeline_mode=pl.Buffered(1) unsupported on this JAX version -> default
        # (double) buffering of the nbr block; everything else unchanged.
        out = _build(False)(ref_in, nbr_pad)

    if w_pad:
        out = out[..., :w]
    return out


def _local_corr_reference(nbr, ref, nbr_size=3):
    """Pure-JAX reference of the PyTorch forward, for a correctness check."""
    b, c, h, w = ref.shape
    k = nbr_size
    pad = k // 2
    nbr_pad = jnp.pad(nbr, ((0, 0), (0, 0), (pad, pad), (pad, pad)), mode="reflect")
    patches = []
    for dy in range(k):
        for dx in range(k):
            patches.append(nbr_pad[:, :, dy:dy + h, dx:dx + w])
    n = jnp.stack(patches, axis=2)                          # (b, c, kk, h, w)
    n = jnp.transpose(n, (0, 3, 4, 2, 1)).reshape(b * h * w, k * k, c)
    r = jnp.transpose(ref, (0, 2, 3, 1)).reshape(b * h * w, c)
    r = r / jnp.maximum(jnp.linalg.norm(r, axis=-1, keepdims=True), _EPS)
    n = n / jnp.maximum(jnp.linalg.norm(n, axis=-1, keepdims=True), _EPS)
    d = jnp.einsum("pc,pjc->pj", r, n)
    wgt = jax.nn.softmax(d, axis=-1)
    out = jnp.einsum("pj,pjc->pc", wgt, n)
    return jnp.transpose(out.reshape(b, h, w, c), (0, 3, 1, 2))


if __name__ == "__main__":
    key = jax.random.PRNGKey(0)
    k1, k2, k3, k4 = jax.random.split(key, 4)

    # Small shape consistent with the module (nf = c = 4, nbr_size = 3).
    b, c, h, w = 2, 4, 16, 16
    ref = jax.random.normal(k1, (b, c, h, w), dtype=jnp.float32)
    nbr = jax.random.normal(k2, (b, c, h, w), dtype=jnp.float32)

    out = jax.block_until_ready(local_corr(nbr, ref, nbr_size=3))
    expected = _local_corr_reference(nbr, ref, nbr_size=3)
    # Tolerance covers the deliberate EUP approx-reciprocal in the softmax denominator;
    # everything else is computed in f32.
    np.testing.assert_allclose(np.asarray(out), np.asarray(expected),
                               rtol=2e-3, atol=2e-3)
    assert out.shape == (b, c, h, w)

    # Also exercise the lane-dense W-padding path (W >= 128, not a multiple of 128).
    b2, h2, w2 = 1, 16, 144
    ref2 = jax.random.normal(k3, (b2, c, h2, w2), dtype=jnp.float32)
    nbr2 = jax.random.normal(k4, (b2, c, h2, w2), dtype=jnp.float32)
    out2 = jax.block_until_ready(local_corr(nbr2, ref2, nbr_size=3))
    expected2 = _local_corr_reference(nbr2, ref2, nbr_size=3)
    np.testing.assert_allclose(np.asarray(out2), np.asarray(expected2),
                               rtol=2e-3, atol=2e-3)
    assert out2.shape == (b2, c, h2, w2)

    print("KERNEL_OK")
</pallas_src>

<mosaic_0001>
module attributes {stable_mosaic.version = 11 : i64} {
  func.func @_local_corr_kernel(%arg0: i32, %arg1: i32, %arg2: memref<1x4x16x16xf32, #tpu.memory_space<vmem>>, %arg3: memref<1x4x18x18xf32, #tpu.memory_space<vmem>>, %arg4: memref<1x4x16x16xf32, #tpu.memory_space<vmem>>) attributes {dimension_semantics = [#tpu.dimension_semantics<parallel>, #tpu.dimension_semantics<arbitrary>], iteration_bounds = array<i64: 2, 1>, scalar_prefetch = 0 : i64, scratch_operands = 0 : i64, tpu.core_type = #tpu.core_type<tc>, window_params = [{transform_indices = @transform_0, window_bounds = array<i64: 1, 4, 16, 16>}, {pipeline_mode = #tpu.pipeline_mode<synchronous>, transform_indices = @transform_1, window_bounds = array<i64: 1, 4, 18, 18>}, {transform_indices = @transform_2, window_bounds = array<i64: 1, 4, 16, 16>}]} {
    %c16_i32 = arith.constant 16 : i32
    %0 = arith.muli %arg1, %c16_i32 : i32
    %1 = tpu.assume_multiple %0, 16 : i32
    %c0 = arith.constant 0 : index
    %c0_0 = arith.constant 0 : index
    %c0_1 = arith.constant 0 : index
    %c0_2 = arith.constant 0 : index
    %2 = vector.load %arg2[%c0, %c0_0, %c0_1, %c0_2] : memref<1x4x16x16xf32, #tpu.memory_space<vmem>>, vector<1x4x16x16xf32>
    %3 = vector.shape_cast %2 : vector<1x4x16x16xf32> to vector<4x16x16xf32>
    %4 = arith.mulf %3, %3 : vector<4x16x16xf32>
    %cst = arith.constant dense<0.000000e+00> : vector<16x16xf32>
    %5 = vector.multi_reduction <add>, %4, %cst [0] : vector<4x16x16xf32> to vector<16x16xf32>
    %6 = vector.shape_cast %5 : vector<16x16xf32> to vector<1x16x16xf32>
    %cst_3 = arith.constant 1.000000e-24 : f32
    %7 = vector.broadcast %cst_3 : f32 to vector<1x16x16xf32>
    %8 = arith.maximumf %6, %7 : vector<1x16x16xf32>
    %9 = math.rsqrt %8 : vector<1x16x16xf32>
    %10 = vector.broadcast %9 : vector<1x16x16xf32> to vector<4x16x16xf32>
    %11 = arith.mulf %3, %10 : vector<4x16x16xf32>
    %c0_4 = arith.constant 0 : index
    %c0_5 = arith.constant 0 : index
    %12 = arith.index_cast %1 : i32 to index
    %c0_6 = arith.constant 0 : index
    %13 = vector.load %arg3[%c0_4, %c0_5, %12, %c0_6] : memref<1x4x18x18xf32, #tpu.memory_space<vmem>>, vector<1x4x18x18xf32>
    %14 = vector.shape_cast %13 : vector<1x4x18x18xf32> to vector<4x18x18xf32>
    %15 = arith.mulf %14, %14 : vector<4x18x18xf32>
    %cst_7 = arith.constant dense<0.000000e+00> : vector<18x18xf32>
    %16 = vector.multi_reduction <add>, %15, %cst_7 [0] : vector<4x18x18xf32> to vector<18x18xf32>
    %17 = vector.shape_cast %16 : vector<18x18xf32> to vector<1x18x18xf32>
    %cst_8 = arith.constant 1.000000e-24 : f32
    %18 = vector.broadcast %cst_8 : f32 to vector<1x18x18xf32>
    %19 = arith.maximumf %17, %18 : vector<1x18x18xf32>
    %20 = math.rsqrt %19 : vector<1x18x18xf32>
    %21 = vector.broadcast %20 : vector<1x18x18xf32> to vector<4x18x18xf32>
    %22 = arith.mulf %14, %21 : vector<4x18x18xf32>
    %23 = vector.extract_strided_slice %22 {offsets = [0, 0, 0], sizes = [4, 18, 16], strides = [1, 1, 1]} : vector<4x18x18xf32> to vector<4x18x16xf32>
    %24 = vector.extract_strided_slice %22 {offsets = [0, 0, 1], sizes = [4, 18, 16], strides = [1, 1, 1]} : vector<4x18x18xf32> to vector<4x18x16xf32>
    %25 = vector.extract_strided_slice %22 {offsets = [0, 0, 2], sizes = [4, 18, 16], strides = [1, 1, 1]} : vector<4x18x18xf32> to vector<4x18x16xf32>
    %26 = vector.extract_strided_slice %23 {offsets = [0, 0, 0], sizes = [4, 16, 16], strides = [1, 1, 1]} : vector<4x18x16xf32> to vector<4x16x16xf32>
    %27 = arith.mulf %11, %26 : vector<4x16x16xf32>
    %cst_9 = arith.constant dense<0.000000e+00> : vector<16x16xf32>
    %28 = vector.multi_reduction <add>, %27, %cst_9 [0] : vector<4x16x16xf32> to vector<16x16xf32>
    %29 = math.exp %28 : vector<16x16xf32>
    %30 = vector.shape_cast %29 : vector<16x16xf32> to vector<1x16x16xf32>
    %31 = vector.broadcast %30 : vector<1x16x16xf32> to vector<4x16x16xf32>
    %32 = arith.mulf %31, %26 : vector<4x16x16xf32>
    %33 = vector.extract_strided_slice %24 {offsets = [0, 0, 0], sizes = [4, 16, 16], strides = [1, 1, 1]} : vector<4x18x16xf32> to vector<4x16x16xf32>
    %34 = arith.mulf %11, %33 : vector<4x16x16xf32>
    %cst_10 = arith.constant dense<0.000000e+00> : vector<16x16xf32>
    %35 = vector.multi_reduction <add>, %34, %cst_10 [0] : vector<4x16x16xf32> to vector<16x16xf32>
    %36 = math.exp %35 : vector<16x16xf32>
    %37 = vector.shape_cast %36 : vector<16x16xf32> to vector<1x16x16xf32>
    %38 = vector.broadcast %37 : vector<1x16x16xf32> to vector<4x16x16xf32>
    %39 = arith.mulf %38, %33 : vector<4x16x16xf32>
    %40 = arith.addf %32, %39 : vector<4x16x16xf32>
    %41 = arith.addf %29, %36 : vector<16x16xf32>
    %42 = vector.extract_strided_slice %25 {offsets = [0, 0, 0], sizes = [4, 16, 16], strides = [1, 1, 1]} : vector<4x18x16xf32> to vector<4x16x16xf32>
    %43 = arith.mulf %11, %42 : vector<4x16x16xf32>
    %cst_11 = arith.constant dense<0.000000e+00> : vector<16x16xf32>
    %44 = vector.multi_reduction <add>, %43, %cst_11 [0] : vector<4x16x16xf32> to vector<16x16xf32>
    %45 = math.exp %44 : vector<16x16xf32>
    %46 = vector.shape_cast %45 : vector<16x16xf32> to vector<1x16x16xf32>
    %47 = vector.broadcast %46 : vector<1x16x16xf32> to vector<4x16x16xf32>
    %48 = arith.mulf %47, %42 : vector<4x16x16xf32>
    %49 = arith.addf %40, %48 : vector<4x16x16xf32>
    %50 = arith.addf %41, %45 : vector<16x16xf32>
    %51 = vector.extract_strided_slice %23 {offsets = [0, 1, 0], sizes = [4, 16, 16], strides = [1, 1, 1]} : vector<4x18x16xf32> to vector<4x16x16xf32>
    %52 = arith.mulf %11, %51 : vector<4x16x16xf32>
    %cst_12 = arith.constant dense<0.000000e+00> : vector<16x16xf32>
    %53 = vector.multi_reduction <add>, %52, %cst_12 [0] : vector<4x16x16xf32> to vector<16x16xf32>
    %54 = math.exp %53 : vector<16x16xf32>
    %55 = vector.shape_cast %54 : vector<16x16xf32> to vector<1x16x16xf32>
    %56 = vector.broadcast %55 : vector<1x16x16xf32> to vector<4x16x16xf32>
    %57 = arith.mulf %56, %51 : vector<4x16x16xf32>
    %58 = arith.addf %49, %57 : vector<4x16x16xf32>
    %59 = arith.addf %50, %54 : vector<16x16xf32>
    %60 = vector.extract_strided_slice %24 {offsets = [0, 1, 0], sizes = [4, 16, 16], strides = [1, 1, 1]} : vector<4x18x16xf32> to vector<4x16x16xf32>
    %61 = arith.mulf %11, %60 : vector<4x16x16xf32>
    %cst_13 = arith.constant dense<0.000000e+00> : vector<16x16xf32>
    %62 = vector.multi_reduction <add>, %61, %cst_13 [0] : vector<4x16x16xf32> to vector<16x16xf32>
    %63 = math.exp %62 : vector<16x16xf32>
    %64 = vector.shape_cast %63 : vector<16x16xf32> to vector<1x16x16xf32>
    %65 = vector.broadcast %64 : vector<1x16x16xf32> to vector<4x16x16xf32>
    %66 = arith.mulf %65, %60 : vector<4x16x16xf32>
    %67 = arith.addf %58, %66 : vector<4x16x16xf32>
    %68 = arith.addf %59, %63 : vector<16x16xf32>
    %69 = vector.extract_strided_slice %25 {offsets = [0, 1, 0], sizes = [4, 16, 16], strides = [1, 1, 1]} : vector<4x18x16xf32> to vector<4x16x16xf32>
    %70 = arith.mulf %11, %69 : vector<4x16x16xf32>
    %cst_14 = arith.constant dense<0.000000e+00> : vector<16x16xf32>
    %71 = vector.multi_reduction <add>, %70, %cst_14 [0] : vector<4x16x16xf32> to vector<16x16xf32>
    %72 = math.exp %71 : vector<16x16xf32>
    %73 = vector.shape_cast %72 : vector<16x16xf32> to vector<1x16x16xf32>
    %74 = vector.broadcast %73 : vector<1x16x16xf32> to vector<4x16x16xf32>
    %75 = arith.mulf %74, %69 : vector<4x16x16xf32>
    %76 = arith.addf %67, %75 : vector<4x16x16xf32>
    %77 = arith.addf %68, %72 : vector<16x16xf32>
    %78 = vector.extract_strided_slice %23 {offsets = [0, 2, 0], sizes = [4, 16, 16], strides = [1, 1, 1]} : vector<4x18x16xf32> to vector<4x16x16xf32>
    %79 = arith.mulf %11, %78 : vector<4x16x16xf32>
    %cst_15 = arith.constant dense<0.000000e+00> : vector<16x16xf32>
    %80 = vector.multi_reduction <add>, %79, %cst_15 [0] : vector<4x16x16xf32> to vector<16x16xf32>
    %81 = math.exp %80 : vector<16x16xf32>
    %82 = vector.shape_cast %81 : vector<16x16xf32> to vector<1x16x16xf32>
    %83 = vector.broadcast %82 : vector<1x16x16xf32> to vector<4x16x16xf32>
    %84 = arith.mulf %83, %78 : vector<4x16x16xf32>
    %85 = arith.addf %76, %84 : vector<4x16x16xf32>
    %86 = arith.addf %77, %81 : vector<16x16xf32>
    %87 = vector.extract_strided_slice %24 {offsets = [0, 2, 0], sizes = [4, 16, 16], strides = [1, 1, 1]} : vector<4x18x16xf32> to vector<4x16x16xf32>
    %88 = arith.mulf %11, %87 : vector<4x16x16xf32>
    %cst_16 = arith.constant dense<0.000000e+00> : vector<16x16xf32>
    %89 = vector.multi_reduction <add>, %88, %cst_16 [0] : vector<4x16x16xf32> to vector<16x16xf32>
    %90 = math.exp %89 : vector<16x16xf32>
    %91 = vector.shape_cast %90 : vector<16x16xf32> to vector<1x16x16xf32>
    %92 = vector.broadcast %91 : vector<1x16x16xf32> to vector<4x16x16xf32>
    %93 = arith.mulf %92, %87 : vector<4x16x16xf32>
    %94 = arith.addf %85, %93 : vector<4x16x16xf32>
    %95 = arith.addf %86, %90 : vector<16x16xf32>
    %96 = vector.extract_strided_slice %25 {offsets = [0, 2, 0], sizes = [4, 16, 16], strides = [1, 1, 1]} : vector<4x18x16xf32> to vector<4x16x16xf32>
    %97 = arith.mulf %11, %96 : vector<4x16x16xf32>
    %cst_17 = arith.constant dense<0.000000e+00> : vector<16x16xf32>
    %98 = vector.multi_reduction <add>, %97, %cst_17 [0] : vector<4x16x16xf32> to vector<16x16xf32>
    %99 = math.exp %98 : vector<16x16xf32>
    %100 = vector.shape_cast %99 : vector<16x16xf32> to vector<1x16x16xf32>
    %101 = vector.broadcast %100 : vector<1x16x16xf32> to vector<4x16x16xf32>
    %102 = arith.mulf %101, %96 : vector<4x16x16xf32>
    %103 = arith.addf %94, %102 : vector<4x16x16xf32>
    %104 = arith.addf %95, %99 : vector<16x16xf32>
    %105 = tpu.reciprocal %104 {approx = true} : vector<16x16xf32> -> vector<16x16xf32>
    %106 = vector.shape_cast %105 : vector<16x16xf32> to vector<1x16x16xf32>
    %107 = vector.broadcast %106 : vector<1x16x16xf32> to vector<4x16x16xf32>
    %108 = arith.mulf %103, %107 : vector<4x16x16xf32>
    %c0_18 = arith.constant 0 : index
    %c0_19 = arith.constant 0 : index
    %c0_20 = arith.constant 0 : index
    %c0_21 = arith.constant 0 : index
    %109 = vector.load %arg4[%c0_18, %c0_19, %c0_20, %c0_21] : memref<1x4x16x16xf32, #tpu.memory_space<vmem>>, vector<1x4x16x16xf32>
    %110 = vector.shape_cast %109 : vector<1x4x16x16xf32> to vector<4x16x16xf32>
    %111 = vector.shape_cast %108 : vector<4x16x16xf32> to vector<1x4x16x16xf32>
    tpu.vector_store %arg4[%c0_18, %c0_19, %c0_20, %c0_21], %111 {strides = array<i32>} : memref<1x4x16x16xf32, #tpu.memory_space<vmem>>, vector<1x4x16x16xf32>,
    return
  }
  func.func @transform_0(%arg0: i32, %arg1: i32) -> (i32, i32, i32, i32) {
    %c0_i32 = arith.constant 0 : i32
    %c0_i32_0 = arith.constant 0 : i32
    %c0_i32_1 = arith.constant 0 : i32
    return %arg0, %c0_i32, %arg1, %c0_i32_0 : i32, i32, i32, i32
  }
  func.func @transform_1(%arg0: i32, %arg1: i32) -> (i32, i32, i32, i32) {
    %c0_i32 = arith.constant 0 : i32
    %c0_i32_0 = arith.constant 0 : i32
    %c0_i32_1 = arith.constant 0 : i32
    %c0_i32_2 = arith.constant 0 : i32
    return %arg0, %c0_i32, %c0_i32_0, %c0_i32_1 : i32, i32, i32, i32
  }
  func.func @transform_2(%arg0: i32, %arg1: i32) -> (i32, i32, i32, i32) {
    %c0_i32 = arith.constant 0 : i32
    %c0_i32_0 = arith.constant 0 : i32
    %c0_i32_1 = arith.constant 0 : i32
    return %arg0, %c0_i32, %arg1, %c0_i32_0 : i32, i32, i32, i32
  }
}

module attributes {stable_mosaic.version = 11 : i64} {
  func.func @_local_corr_kernel(%arg0: i32, %arg1: i32, %arg2: memref<1x4x16x16xf32, #tpu.memory_space<vmem>>, %arg3: memref<1x4x18x18xf32, #tpu.memory_space<vmem>>, %arg4: memref<1x4x16x16xf32, #tpu.memory_space<vmem>>) attributes {dimension_semantics = [#tpu.dimension_semantics<parallel>, #tpu.dimension_semantics<arbitrary>], iteration_bounds = array<i64: 2, 1>, scalar_prefetch = 0 : i64, scratch_operands = 0 : i64, tpu.core_type = #tpu.core_type<tc>, window_params = [{transform_indices = @transform_0, window_bounds = array<i64: 1, 4, 16, 16>}, {transform_indices = @transform_1, window_bounds = array<i64: 1, 4, 18, 18>}, {transform_indices = @transform_2, window_bounds = array<i64: 1, 4, 16, 16>}]} {
    %c16_i32 = arith.constant 16 : i32
    %0 = arith.muli %arg1, %c16_i32 : i32
    %1 = tpu.assume_multiple %0, 16 : i32
    %c0 = arith.constant 0 : index
    %c0_0 = arith.constant 0 : index
    %c0_1 = arith.constant 0 : index
    %c0_2 = arith.constant 0 : index
    %2 = vector.load %arg2[%c0, %c0_0, %c0_1, %c0_2] : memref<1x4x16x16xf32, #tpu.memory_space<vmem>>, vector<1x4x16x16xf32>
    %3 = vector.shape_cast %2 : vector<1x4x16x16xf32> to vector<4x16x16xf32>
    %4 = arith.mulf %3, %3 : vector<4x16x16xf32>
    %cst = arith.constant dense<0.000000e+00> : vector<16x16xf32>
    %5 = vector.multi_reduction <add>, %4, %cst [0] : vector<4x16x16xf32> to vector<16x16xf32>
    %6 = vector.shape_cast %5 : vector<16x16xf32> to vector<1x16x16xf32>
    %cst_3 = arith.constant 1.000000e-24 : f32
    %7 = vector.broadcast %cst_3 : f32 to vector<1x16x16xf32>
    %8 = arith.maximumf %6, %7 : vector<1x16x16xf32>
    %9 = math.rsqrt %8 : vector<1x16x16xf32>
    %10 = vector.broadcast %9 : vector<1x16x16xf32> to vector<4x16x16xf32>
    %11 = arith.mulf %3, %10 : vector<4x16x16xf32>
    %c0_4 = arith.constant 0 : index
    %c0_5 = arith.constant 0 : index
    %12 = arith.index_cast %1 : i32 to index
    %c0_6 = arith.constant 0 : index
    %13 = vector.load %arg3[%c0_4, %c0_5, %12, %c0_6] : memref<1x4x18x18xf32, #tpu.memory_space<vmem>>, vector<1x4x18x18xf32>
    %14 = vector.shape_cast %13 : vector<1x4x18x18xf32> to vector<4x18x18xf32>
    %15 = arith.mulf %14, %14 : vector<4x18x18xf32>
    %cst_7 = arith.constant dense<0.000000e+00> : vector<18x18xf32>
    %16 = vector.multi_reduction <add>, %15, %cst_7 [0] : vector<4x18x18xf32> to vector<18x18xf32>
    %17 = vector.shape_cast %16 : vector<18x18xf32> to vector<1x18x18xf32>
    %cst_8 = arith.constant 1.000000e-24 : f32
    %18 = vector.broadcast %cst_8 : f32 to vector<1x18x18xf32>
    %19 = arith.maximumf %17, %18 : vector<1x18x18xf32>
    %20 = math.rsqrt %19 : vector<1x18x18xf32>
    %21 = vector.broadcast %20 : vector<1x18x18xf32> to vector<4x18x18xf32>
    %22 = arith.mulf %14, %21 : vector<4x18x18xf32>
    %23 = vector.extract_strided_slice %22 {offsets = [0, 0, 0], sizes = [4, 18, 16], strides = [1, 1, 1]} : vector<4x18x18xf32> to vector<4x18x16xf32>
    %24 = vector.extract_strided_slice %22 {offsets = [0, 0, 1], sizes = [4, 18, 16], strides = [1, 1, 1]} : vector<4x18x18xf32> to vector<4x18x16xf32>
    %25 = vector.extract_strided_slice %22 {offsets = [0, 0, 2], sizes = [4, 18, 16], strides = [1, 1, 1]} : vector<4x18x18xf32> to vector<4x18x16xf32>
    %26 = vector.extract_strided_slice %23 {offsets = [0, 0, 0], sizes = [4, 16, 16], strides = [1, 1, 1]} : vector<4x18x16xf32> to vector<4x16x16xf32>
    %27 = arith.mulf %11, %26 : vector<4x16x16xf32>
    %cst_9 = arith.constant dense<0.000000e+00> : vector<16x16xf32>
    %28 = vector.multi_reduction <add>, %27, %cst_9 [0] : vector<4x16x16xf32> to vector<16x16xf32>
    %29 = math.exp %28 : vector<16x16xf32>
    %30 = vector.shape_cast %29 : vector<16x16xf32> to vector<1x16x16xf32>
    %31 = vector.broadcast %30 : vector<1x16x16xf32> to vector<4x16x16xf32>
    %32 = arith.mulf %31, %26 : vector<4x16x16xf32>
    %33 = vector.extract_strided_slice %24 {offsets = [0, 0, 0], sizes = [4, 16, 16], strides = [1, 1, 1]} : vector<4x18x16xf32> to vector<4x16x16xf32>
    %34 = arith.mulf %11, %33 : vector<4x16x16xf32>
    %cst_10 = arith.constant dense<0.000000e+00> : vector<16x16xf32>
    %35 = vector.multi_reduction <add>, %34, %cst_10 [0] : vector<4x16x16xf32> to vector<16x16xf32>
    %36 = math.exp %35 : vector<16x16xf32>
    %37 = vector.shape_cast %36 : vector<16x16xf32> to vector<1x16x16xf32>
    %38 = vector.broadcast %37 : vector<1x16x16xf32> to vector<4x16x16xf32>
    %39 = arith.mulf %38, %33 : vector<4x16x16xf32>
    %40 = arith.addf %32, %39 : vector<4x16x16xf32>
    %41 = arith.addf %29, %36 : vector<16x16xf32>
    %42 = vector.extract_strided_slice %25 {offsets = [0, 0, 0], sizes = [4, 16, 16], strides = [1, 1, 1]} : vector<4x18x16xf32> to vector<4x16x16xf32>
    %43 = arith.mulf %11, %42 : vector<4x16x16xf32>
    %cst_11 = arith.constant dense<0.000000e+00> : vector<16x16xf32>
    %44 = vector.multi_reduction <add>, %43, %cst_11 [0] : vector<4x16x16xf32> to vector<16x16xf32>
    %45 = math.exp %44 : vector<16x16xf32>
    %46 = vector.shape_cast %45 : vector<16x16xf32> to vector<1x16x16xf32>
    %47 = vector.broadcast %46 : vector<1x16x16xf32> to vector<4x16x16xf32>
    %48 = arith.mulf %47, %42 : vector<4x16x16xf32>
    %49 = arith.addf %40, %48 : vector<4x16x16xf32>
    %50 = arith.addf %41, %45 : vector<16x16xf32>
    %51 = vector.extract_strided_slice %23 {offsets = [0, 1, 0], sizes = [4, 16, 16], strides = [1, 1, 1]} : vector<4x18x16xf32> to vector<4x16x16xf32>
    %52 = arith.mulf %11, %51 : vector<4x16x16xf32>
    %cst_12 = arith.constant dense<0.000000e+00> : vector<16x16xf32>
    %53 = vector.multi_reduction <add>, %52, %cst_12 [0] : vector<4x16x16xf32> to vector<16x16xf32>
    %54 = math.exp %53 : vector<16x16xf32>
    %55 = vector.shape_cast %54 : vector<16x16xf32> to vector<1x16x16xf32>
    %56 = vector.broadcast %55 : vector<1x16x16xf32> to vector<4x16x16xf32>
    %57 = arith.mulf %56, %51 : vector<4x16x16xf32>
    %58 = arith.addf %49, %57 : vector<4x16x16xf32>
    %59 = arith.addf %50, %54 : vector<16x16xf32>
    %60 = vector.extract_strided_slice %24 {offsets = [0, 1, 0], sizes = [4, 16, 16], strides = [1, 1, 1]} : vector<4x18x16xf32> to vector<4x16x16xf32>
    %61 = arith.mulf %11, %60 : vector<4x16x16xf32>
    %cst_13 = arith.constant dense<0.000000e+00> : vector<16x16xf32>
    %62 = vector.multi_reduction <add>, %61, %cst_13 [0] : vector<4x16x16xf32> to vector<16x16xf32>
    %63 = math.exp %62 : vector<16x16xf32>
    %64 = vector.shape_cast %63 : vector<16x16xf32> to vector<1x16x16xf32>
    %65 = vector.broadcast %64 : vector<1x16x16xf32> to vector<4x16x16xf32>
    %66 = arith.mulf %65, %60 : vector<4x16x16xf32>
    %67 = arith.addf %58, %66 : vector<4x16x16xf32>
    %68 = arith.addf %59, %63 : vector<16x16xf32>
    %69 = vector.extract_strided_slice %25 {offsets = [0, 1, 0], sizes = [4, 16, 16], strides = [1, 1, 1]} : vector<4x18x16xf32> to vector<4x16x16xf32>
    %70 = arith.mulf %11, %69 : vector<4x16x16xf32>
    %cst_14 = arith.constant dense<0.000000e+00> : vector<16x16xf32>
    %71 = vector.multi_reduction <add>, %70, %cst_14 [0] : vector<4x16x16xf32> to vector<16x16xf32>
    %72 = math.exp %71 : vector<16x16xf32>
    %73 = vector.shape_cast %72 : vector<16x16xf32> to vector<1x16x16xf32>
    %74 = vector.broadcast %73 : vector<1x16x16xf32> to vector<4x16x16xf32>
    %75 = arith.mulf %74, %69 : vector<4x16x16xf32>
    %76 = arith.addf %67, %75 : vector<4x16x16xf32>
    %77 = arith.addf %68, %72 : vector<16x16xf32>
    %78 = vector.extract_strided_slice %23 {offsets = [0, 2, 0], sizes = [4, 16, 16], strides = [1, 1, 1]} : vector<4x18x16xf32> to vector<4x16x16xf32>
    %79 = arith.mulf %11, %78 : vector<4x16x16xf32>
    %cst_15 = arith.constant dense<0.000000e+00> : vector<16x16xf32>
    %80 = vector.multi_reduction <add>, %79, %cst_15 [0] : vector<4x16x16xf32> to vector<16x16xf32>
    %81 = math.exp %80 : vector<16x16xf32>
    %82 = vector.shape_cast %81 : vector<16x16xf32> to vector<1x16x16xf32>
    %83 = vector.broadcast %82 : vector<1x16x16xf32> to vector<4x16x16xf32>
    %84 = arith.mulf %83, %78 : vector<4x16x16xf32>
    %85 = arith.addf %76, %84 : vector<4x16x16xf32>
    %86 = arith.addf %77, %81 : vector<16x16xf32>
    %87 = vector.extract_strided_slice %24 {offsets = [0, 2, 0], sizes = [4, 16, 16], strides = [1, 1, 1]} : vector<4x18x16xf32> to vector<4x16x16xf32>
    %88 = arith.mulf %11, %87 : vector<4x16x16xf32>
    %cst_16 = arith.constant dense<0.000000e+00> : vector<16x16xf32>
    %89 = vector.multi_reduction <add>, %88, %cst_16 [0] : vector<4x16x16xf32> to vector<16x16xf32>
    %90 = math.exp %89 : vector<16x16xf32>
    %91 = vector.shape_cast %90 : vector<16x16xf32> to vector<1x16x16xf32>
    %92 = vector.broadcast %91 : vector<1x16x16xf32> to vector<4x16x16xf32>
    %93 = arith.mulf %92, %87 : vector<4x16x16xf32>
    %94 = arith.addf %85, %93 : vector<4x16x16xf32>
    %95 = arith.addf %86, %90 : vector<16x16xf32>
    %96 = vector.extract_strided_slice %25 {offsets = [0, 2, 0], sizes = [4, 16, 16], strides = [1, 1, 1]} : vector<4x18x16xf32> to vector<4x16x16xf32>
    %97 = arith.mulf %11, %96 : vector<4x16x16xf32>
    %cst_17 = arith.constant dense<0.000000e+00> : vector<16x16xf32>
    %98 = vector.multi_reduction <add>, %97, %cst_17 [0] : vector<4x16x16xf32> to vector<16x16xf32>
    %99 = math.exp %98 : vector<16x16xf32>
    %100 = vector.shape_cast %99 : vector<16x16xf32> to vector<1x16x16xf32>
    %101 = vector.broadcast %100 : vector<1x16x16xf32> to vector<4x16x16xf32>
    %102 = arith.mulf %101, %96 : vector<4x16x16xf32>
    %103 = arith.addf %94, %102 : vector<4x16x16xf32>
    %104 = arith.addf %95, %99 : vector<16x16xf32>
    %105 = tpu.reciprocal %104 {approx = true} : vector<16x16xf32> -> vector<16x16xf32>
    %106 = vector.shape_cast %105 : vector<16x16xf32> to vector<1x16x16xf32>
    %107 = vector.broadcast %106 : vector<1x16x16xf32> to vector<4x16x16xf32>
    %108 = arith.mulf %103, %107 : vector<4x16x16xf32>
    %c0_18 = arith.constant 0 : index
    %c0_19 = arith.constant 0 : index
    %c0_20 = arith.constant 0 : index
    %c0_21 = arith.constant 0 : index
    %109 = vector.load %arg4[%c0_18, %c0_19, %c0_20, %c0_21] : memref<1x4x16x16xf32, #tpu.memory_space<vmem>>, vector<1x4x16x16xf32>
    %110 = vector.shape_cast %109 : vector<1x4x16x16xf32> to vector<4x16x16xf32>
    %111 = vector.shape_cast %108 : vector<4x16x16xf32> to vector<1x4x16x16xf32>
    tpu.vector_store %arg4[%c0_18, %c0_19, %c0_20, %c0_21], %111 {strides = array<i32>} : memref<1x4x16x16xf32, #tpu.memory_space<vmem>>, vector<1x4x16x16xf32>,
    return
  }
  func.func @transform_0(%arg0: i32, %arg1: i32) -> (i32, i32, i32, i32) {
    %c0_i32 = arith.constant 0 : i32
    %c0_i32_0 = arith.constant 0 : i32
    %c0_i32_1 = arith.constant 0 : i32
    return %arg0, %c0_i32, %arg1, %c0_i32_0 : i32, i32, i32, i32
  }
  func.func @transform_1(%arg0: i32, %arg1: i32) -> (i32, i32, i32, i32) {
    %c0_i32 = arith.constant 0 : i32
    %c0_i32_0 = arith.constant 0 : i32
    %c0_i32_1 = arith.constant 0 : i32
    %c0_i32_2 = arith.constant 0 : i32
    return %arg0, %c0_i32, %c0_i32_0, %c0_i32_1 : i32, i32, i32, i32
  }
  func.func @transform_2(%arg0: i32, %arg1: i32) -> (i32, i32, i32, i32) {
    %c0_i32 = arith.constant 0 : i32
    %c0_i32_0 = arith.constant 0 : i32
    %c0_i32_1 = arith.constant 0 : i32
    return %arg0, %c0_i32, %arg1, %c0_i32_0 : i32, i32, i32, i32
  }
}

</mosaic_0001>

<bundles_post_ra>
// kernel: tpu_custom_call.1
= control target key start
LH: loop header
LB: loop body
LE: loop exit
PB: predicated region body
PF: predicated region fallthrough
CT: control target
= control target key end

     0   :  { %7 = vsyncpa [#allocation3], 0  ;;  %s2214_s0 = inlined_call_operand.vmem [shape: f32[2,4,16,16], index: 0, kind: input, shape index: {}]   ;;  %s2215_s1 = inlined_call_operand.vmem [shape: f32[2,4,18,18], index: 1, kind: input, shape index: {}]   ;;  %s2216_s2 = inlined_call_operand.hbm [shape: f32[2,4,16,16], index: 2, kind: output, shape index: {}]  }
   0x1   :  { %9 = vsyncpa [#allocation3 + $0x1], 0  ;;  %s1257_s9 = smov 0   ;;  %s1259_s10 = smov 0  }
   0x2   :  { %s1261_s11 = smov 0   ;;  %s1263_s12 = smov 0  }
   0x3   :  { %s1265_s13 = smov 0   ;;  %s1267_s14 = smov 0  }
   0x4 LB: > { %s1033_s15 = sadd.s32 4294967295, %s1235_s14   ;;  %s1034_s16 = sadd.s32 4294967294, %s1235_s14   ;;  %s1235_s14 = sphi %s1267_s14, %s15_s14   ;;  %s1231_s13 = sphi %s1265_s13, %s2263_s13   ;;  %s1227_s12 = sphi %s1263_s12, %s2262_s12   ;;  %s1223_s11 = sphi %s1261_s11, %s2261_s11   ;;  %s1219_s10 = sphi %s1259_s10, %s2260_s10   ;;  %s1215_s9 = sphi %s1257_s9, %s2259_s9  }
   0x5   : > { %s27_s17 = sadd.s32 1, %s1231_s13  ;;  %s90_s18 = sadd.s32 1, %s1223_s11 }
   0x6   : > { %p29_p0 = scmp.ge.s32.totalorder %s27_s17, 2  ;;  %p100_p1 = scmp.ne.s32.totalorder %s1223_s11, %s1219_s10 }
   0x7   : > { %p101_p2 = scmp.eq.s32.totalorder %s1033_s15, 1  ;;  %p106_p3 = scmp.ne.s32.totalorder %s1219_s10, %s1215_s9 }
   0x8   : > { %s2265_s17 = smov (%p29_p0, %s27_s17), 0  ;;  %p107_p5 = scmp.eq.s32.totalorder %s1034_s16, 1 }
   0x9   : > { %p1297_p4 = por %p101_p2, %p100_p1  ;;  %s85_s20 = ssub.s32 %s1231_s13, %s2265_s17 }
   0xa   : > { %p1037_p6 = scmp.ge.s32.totalorder %s1235_s14, 1  ;;  %p88_p7 = scmp.eq.s32.totalorder %s85_s20, 0 }
   0xb   : > { %p1304_p8 = por %p107_p5, %p106_p3  ;;  %p146_p9 = scmp.lt.s32.totalorder %s1235_s14, 3 }
   0xc   : > { %s1310_s22 = scalar_select %p88_p7, %s1223_s11, %s90_s18  }
   0xd   : > { %p147_p10 = pnand %p1037_p6, %p146_p9 }
   0xf   : > { %150 = sbr.rel (%p147_p10) target bundleno = 319 (0x13f), region = 28 }
  0x14   : > { %p178_p11 = scmp.lt.s32.totalorder %s1227_s12, 1  ;;  %vm210_vm0 = vcmask 130048   ;;  %vm262_vm1 = vcmask 146432   ;;  %vm277_vm2 = vcmask 140288   ;;  %vm485_vm3 = vcmask 1046528   ;;  %s1237_s4 = smov 127  }
  0x15   : > { %vm694_vm4 = vcmask 1045504   ;;  %s1238_s5 = smov 126   ;;  %s174_s6 = sand.u32 1, %s1219_s10  }
  0x16   : > { %s179_s23 = scalar_select %p178_p11, %s1227_s12, 1 }
  0x17   : > { %s1038_s7 = sshll.u32 %s174_s6, 6  ;;  %s1048_s8 = sshll.u32 %s1227_s12, 10 }
  0x18   : > { %s1049_s24 = smul.u32 96, %s179_s23  ;;  %s1047_s25 = sshll.u32 %s179_s23, 6 }
  0x19   : > { %s1317_s28 = scalar_lea.vmem %s2214_s0, %s1047_s25  ;;  %s176_s15 = scalar_lea.vmem [#allocation2], %s1038_s7 }
  0x1a   : > { %s1322_s3 = scalar_lea.vmem %s2215_s1, %s1049_s24  ;;  %v1325_v0 = vld [vmem:[%s1317_s28] sm:$0xff]  ;;  %v1328_v1 = vld [vmem:[%s1317_s28 + $0x10] sm:$0xff]  ;;  %v1382_v26 = vld [vmem:[%s1317_s28 + $0x8] sm:$0xff]  ;;  %s937_s16 = sshll.u32 %s176_s15, 4  ;;  %s2159_s16 = int_to_ptr.vmem [resolvable:$true] %s937_s16 }
  0x1b   : > { %v1331_v2 = vld [vmem:[%s1317_s28 + $0x20] sm:$0xff]  ;;  %v1337_v4 = vld [vmem:[%s1322_s3 + $0x18] sm:$0xff]  ;;  %v1340_v5 = vld [vmem:[%s1322_s3 + $0x30] sm:$0xff]  ;;  %v202_v6 = vmul.f32 %v1325_v0, %v1325_v0  ;;  %v204_v7 = vmul.f32 %v1328_v1, %v1328_v1  ;;  %v203_v40 = vmul.f32 %v1382_v26, %v1382_v26  ;;  %s2157_s23 = scalar_lea.hbm %s2216_s2, %s1048_s8  ;;  %s2169_s12 = scalar_lea.sflag [#allocation3], %s174_s6 }
  0x1c   : > { %v1334_v3 = vld [vmem:[%s1322_s3] sm:$0xff]  ;;  %v206_v8 = vmul.f32 %v1331_v2, %v1331_v2  ;;  %v1349_v9 = vld [vmem:[%s1322_s3 + $0x48] sm:$0xff]  ;;  %v253_v11 = vmul.f32 %v1337_v4, %v1337_v4  ;;  %v256_v12 = vmul.f32 %v1340_v5, %v1340_v5  ;;  %v1358_v13 = vld [vmem:[%s1317_s28 + $0x30] sm:$0xff]  ;;  %s1159_s24 = scalar_lea.vmem %s2159_s16, 1024  ;;  %s1239_s25 = smov [#allocation2]  }
  0x1d   : > { %v250_v10 = vmul.f32 %v1334_v3, %v1334_v3  ;;  %v259_v14 = vmul.f32 %v1349_v9, %v1349_v9  ;;  %v208_v15 = vmul.f32 %v1358_v13, %v1358_v13  ;;  %v211_v16 = vsel %vm210_vm0, %v202_v6, 0.0  ;;  %v1367_v18 = vld [vmem:[%s1322_s3 + $0x8] sm:$0xff]  ;;  %v1370_v19 = vld [vmem:[%s1322_s3 + $0x20] sm:$0xff]  ;;  %v1373_v20 = vld [vmem:[%s1322_s3 + $0x38] sm:$0xff]  ;;  %p1160_p12 = scmp.ne.s32.totalorder %s2159_s16, %s1159_s24  ;;  %s1163_s26 = sshll.u32 %s1239_s25, 4  ;;  %s1164_s26 = int_to_ptr.vmem [resolvable:$false] %s1163_s26 }
  0x1e   : > { %v212_v17 = vsel %vm210_vm0, %v204_v7, 0.0  ;;  %v264_v22 = vsel %vm262_vm1, %v253_v11, 0.0  ;;  %v266_v23 = vsel %vm262_vm1, %v256_v12, 0.0  ;;  %v1379_v25 = vld [vmem:[%s1322_s3 + $0x50] sm:$0xff]  ;;  %v1385_v27 = vld [vmem:[%s1317_s28 + $0x18] sm:$0xff]  ;;  %v214_v30 = vsel %vm210_vm0, %v206_v8, 0.0  ;;  %p1166_p1 = scmp.lt.s32.totalorder %s2159_s16, %s1164_s26 }
  0x1f   : > { %v263_v21 = vsel %vm262_vm1, %v250_v10, 0.0  ;;  %v213_v24 = vadd.f32 %v212_v17, %v211_v16  ;;  %v268_v29 = vsel %vm262_vm1, %v259_v14, 0.0  ;;  %v216_v31 = vsel %vm210_vm0, %v208_v15, 0.0  ;;  %v1397_v36 = vld [vmem:[%s1317_s28 + $0x28] sm:$0xff]  ;;  %v1402_v39 = vld [vmem:[%s1317_s28 + $0x38] sm:$0xff]  ;;  %p1161_p13 = pnand %p1160_p12, %p1297_p4  ;;  %s1165_s27 = scalar_lea.vmem %s1164_s26, 2048 }
  0x20   : > { %v265_v28 = vadd.f32 %v264_v22, %v263_v21  ;;  %v251_v33 = vmul.f32 %v1367_v18, %v1367_v18  ;;  %v254_v34 = vmul.f32 %v1370_v19, %v1370_v19  ;;  %v257_v35 = vmul.f32 %v1373_v20, %v1373_v20  ;;  %v1415_v50 = vld [vmem:[%s1322_s3 + $0x10] sm:$0x3]  ;;  %v1418_v51 = vld [vmem:[%s1322_s3 + $0x28] sm:$0x3]  ;;  %v1425_v56 = vld [vmem:[%s1322_s3 + $0x40] sm:$0x3]  ;;  %p1167_p2 = scmp.lt.s32.totalorder %s1165_s27, %s1159_s24 }
  0x21   : > { %v215_v32 = vadd.f32 %v214_v30, %v213_v24  ;;  %v260_v38 = vmul.f32 %v1379_v25, %v1379_v25  ;;  %v205_v41 = vmul.f32 %v1385_v27, %v1385_v27  ;;  %v207_v49 = vmul.f32 %v1397_v36, %v1397_v36  ;;  %v1429_v61 = vld [vmem:[%s1322_s3 + $0x58] sm:$0x3]  ;;  %p1162_p0 = pneg %p1161_p13 }
  0x22   : > { %v267_v37 = vadd.f32 %v266_v23, %v265_v28  ;;  %v270_v43 = vsel %vm262_vm1, %v251_v33, 0.0  ;;  %v271_v44 = vsel %vm262_vm1, %v254_v34, 0.0  ;;  %v273_v45 = vsel %vm262_vm1, %v257_v35, 0.0  ;;  %p1168_p3 = por %p1167_p2, %p1166_p1 }
  0x23   : > { %v217_v42 = vadd.f32 %v216_v31, %v215_v32  ;;  %v272_v47 = vadd.f32 %v271_v44, %v270_v43  ;;  %v275_v48 = vsel %vm262_vm1, %v260_v38, 0.0  ;;  %v209_v53 = vmul.f32 %v1402_v39, %v1402_v39 }
  0x24   : > { %v269_v46 = vadd.f32 %v268_v29, %v267_v37  ;;  %v218_v54 = vsel %vm210_vm0, %v203_v40, 0.0  ;;  %v219_v55 = vsel %vm210_vm0, %v205_v41, 0.0  ;;  %v221_v60 = vsel %vm210_vm0, %v207_v49, 0.0  ;;  %p1169_p5 = pnand %p1168_p3, %p1162_p0 }
  0x25   : > { %v225_v52 = vmax.f32 %v217_v42, 1e-24  ;;  %v274_v58 = vadd.f32 %v273_v45, %v272_v47  ;;  %v220_v59 = vadd.f32 %v219_v55, %v218_v54  ;;  %v223_v62 = vsel %vm210_vm0, %v209_v53, 0.0 }
  0x26   : > { %v285_v57 = vmax.f32 %v269_v46, 1e-24  ;;  %v252_v63 = vmul.f32 %v1415_v50, %v1415_v50  ;;  %v255_v6 = vmul.f32 %v1418_v51, %v1418_v51  ;;  %v258_v10 = vmul.f32 %v1425_v56, %v1425_v56 }
  0x27   : > { %1109 = vrsqrt.f32 %v225_v52  ;;  %v276_v7 = vadd.f32 %v275_v48, %v274_v58  ;;  %v222_v8 = vadd.f32 %v221_v60, %v220_v59  ;;  %v261_v11 = vmul.f32 %v1429_v61, %v1429_v61 }
  0x28   : > { %1111 = vrsqrt.f32 %v285_v57  ;;  %v278_v12 = vsel %vm277_vm2, %v252_v63, 0.0  ;;  %v279_v14 = vsel %vm277_vm2, %v255_v6, 0.0  ;;  %v281_v21 = vsel %vm277_vm2, %v258_v10, 0.0 }
  0x29   : > { %v286_v15 = vmax.f32 %v276_v7, 1e-24  ;;  %v224_v16 = vadd.f32 %v223_v62, %v222_v8  ;;  %v280_v17 = vadd.f32 %v279_v14, %v278_v12  ;;  %v283_v22 = vsel %vm277_vm2, %v261_v11, 0.0 }
  0x2b   : > { %1113 = vrsqrt.f32 %v286_v15  ;;  %v226_v23 = vmax.f32 %v224_v16, 1e-24  ;;  %v282_v24 = vadd.f32 %v281_v21, %v280_v17 }
  0x2d   : > { %1115 = vrsqrt.f32 %v226_v23  ;;  %v284_v28 = vadd.f32 %v283_v22, %v282_v24 }
  0x2f   : > { %v287_v29 = vmax.f32 %v284_v28, 1e-24 }
  0x31   : > { %1117 = vrsqrt.f32 %v287_v29 }
  0x34   : > { %v1110_v30 = vpop.eup %1109 }
  0x35   : > { %v1112_v31 = vpop.eup %1111  ;;  %v1445_v32 = vmul.f32 %v1110_v30, %v1328_v1  ;;  %v1448_v33 = vmul.f32 %v1110_v30, %v1325_v0  ;;  %v1451_v34 = vmul.f32 %v1110_v30, %v1358_v13  ;;  %v1463_v40 = vmul.f32 %v1110_v30, %v1331_v2 }
  0x36   : > { %v1454_v35 = vmul.f32 %v1112_v31, %v1337_v4  ;;  %v1457_v37 = vmul.f32 %v1112_v31, %v1334_v3  ;;  %v1460_v38 = vmul.f32 %v1112_v31, %v1340_v5  ;;  %v1466_v1 = vmul.f32 %v1112_v31, %v1349_v9 }
  0x38   : > { %349 = vrot.lane.b32.xlu1 %v1454_v35, %s1237_s4  ;;  %v305_v0 = vmul.f32 %v1454_v35, %v1445_v32  ;;  %345 = vrot.lane.b32.xlu0 %v1457_v37, %s1237_s4  ;;  %v303_v3 = vmul.f32 %v1457_v37, %v1448_v33  ;;  %v307_v2 = vmul.f32 %v1460_v38, %v1463_v40  ;;  %v486_v4 = vrot.slane %v1457_v37, 1  ;;  %v1114_v5 = vpop.eup %1113 }
  0x39   : > { %v309_v9 = vmul.f32 %v1466_v1, %v1451_v34  ;;  %v491_v13 = vrot.slane %v1454_v35, 1  ;;  %v496_v41 = vrot.slane %v1460_v38, 1  ;;  %v501_v42 = vrot.slane %v1466_v1, 1 }
  0x3a   : > { %v312_v43 = vsel %vm210_vm0, %v305_v0, 0.0  ;;  %v311_v44 = vsel %vm210_vm0, %v303_v3, 0.0  ;;  %v1487_v45 = vmul.f32 %v1114_v5, %v1370_v19  ;;  %v1490_v46 = vmul.f32 %v1114_v5, %v1367_v18  ;;  %v1116_v47 = vpop.eup %1115 }
  0x3b   : > { %v313_v48 = vadd.f32 %v312_v43, %v311_v44  ;;  %v1493_v49 = vmul.f32 %v1114_v5, %v1373_v20  ;;  %v314_v52 = vsel %vm210_vm0, %v307_v2, 0.0  ;;  %v1497_v53 = vmul.f32 %v1114_v5, %v1379_v25 }
  0x3c   : > { %351 = vrot.lane.b32.xlu1 %v1487_v45, %s1237_s4  ;;  %v1502_v54 = vmul.f32 %v1116_v47, %v1385_v27  ;;  %347 = vrot.lane.b32.xlu0 %v1490_v46, %s1237_s4  ;;  %v1507_v18 = vmul.f32 %v1116_v47, %v1382_v26  ;;  %v1510_v19 = vmul.f32 %v1116_v47, %v1397_v36  ;;  %v316_v20 = vsel %vm210_vm0, %v309_v9, 0.0 }
  0x3d   : > { %v315_v55 = vadd.f32 %v314_v52, %v313_v48  ;;  %v1514_v25 = vmul.f32 %v1116_v47, %v1402_v39  ;;  %v487_v57 = vrot.slane %v1490_v46, 1  ;;  %v492_v27 = vrot.slane %v1487_v45, 1 }
  0x3e   : > { %v306_v58 = vmul.f32 %v1487_v45, %v1502_v54  ;;  %v304_v26 = vmul.f32 %v1490_v46, %v1507_v18  ;;  %v308_v36 = vmul.f32 %v1493_v49, %v1510_v19  ;;  %v497_v59 = vrot.slane %v1493_v49, 1  ;;  %v1118_v60 = vpop.eup %1117 }
  0x3f   : > { %v310_v39 = vmul.f32 %v1497_v53, %v1514_v25  ;;  %v317_v62 = vadd.f32 %v316_v20, %v315_v55  ;;  %v1528_v63 = vsel %vm485_vm3, %v486_v4, %v487_v57  ;;  %v1531_v6 = vsel %vm485_vm3, %v491_v13, %v492_v27 }
  0x40   : > { %v319_v7 = vsel %vm210_vm0, %v306_v58, 0.0  ;;  %v318_v8 = vsel %vm210_vm0, %v304_v26, 0.0  ;;  %355 = vrot.lane.b32.xlu1 %v1493_v49, %s1237_s4  ;;  %v321_v10 = vsel %vm210_vm0, %v308_v36, 0.0  ;;  %353 = vrot.lane.b32.xlu0 %v1460_v38, %s1237_s4  ;;  %v293_v11 = vmul.f32 %v1118_v60, %v1415_v50 }
  0x41   : > { %v320_v12 = vadd.f32 %v319_v7, %v318_v8  ;;  %v323_v14 = vsel %vm210_vm0, %v310_v39, 0.0  ;;  %v325_v15 = vmul.f32 1.442695, %v317_v62  ;;  %v514_v16 = vmul.f32 %v1528_v63, %v1448_v33 }
  0x42   : > { %v489_v17 = vrot.slane %v293_v11, 1  ;;  %v296_v21 = vmul.f32 %v1118_v60, %v1418_v51  ;;  %v516_v22 = vmul.f32 %v1531_v6, %v1445_v32  ;;  %v1548_v23 = vmul.f32 %v1118_v60, %v1425_v56 }
  0x43   : > { %v322_v24 = vadd.f32 %v321_v10, %v320_v12  ;;  %1119 = vpow2.f32 %v325_v15  ;;  %v522_v50 = vsel %vm210_vm0, %v514_v16, 0.0  ;;  %v1552_v28 = vsel %vm485_vm3, %v496_v41, %v497_v59 }
  0x44   : > { %415 = vrot.lane.b32.xlu1 %v1490_v46, %s1238_s5  ;;  %413 = vrot.lane.b32.xlu0 %v1457_v37, %s1238_s5  ;;  %v1559_v51 = vsel %vm485_vm3, %v487_v57, %v489_v17  ;;  %v494_v29 = vrot.slane %v296_v21, 1  ;;  %v523_v56 = vsel %vm210_vm0, %v516_v22, 0.0  ;;  %v499_v30 = vrot.slane %v1548_v23, 1 }
  0x45   : > { %v324_v31 = vadd.f32 %v323_v14, %v322_v24  ;;  %v515_v0 = vmul.f32 %v1559_v51, %v1507_v18  ;;  %v524_v3 = vadd.f32 %v523_v56, %v522_v50  ;;  %v518_v2 = vmul.f32 %v1552_v28, %v1463_v40 }
  0x46   : > { %v1568_v4 = vsel %vm485_vm3, %v492_v27, %v494_v29  ;;  %v1571_v5 = vsel %vm485_vm3, %v497_v59, %v499_v30  ;;  %v1574_v9 = vmul.f32 %v1118_v60, %v1429_v61  ;;  %v502_v13 = vrot.slane %v1497_v53, 1 }
  0x47   : > { %v327_v41 = vmul.f32 1.442695, %v324_v31  ;;  %v529_v43 = vsel %vm210_vm0, %v515_v0, 0.0  ;;  %v517_v44 = vmul.f32 %v1568_v4, %v1502_v54  ;;  %v519_v47 = vmul.f32 %v1571_v5, %v1510_v19 }
  0x48   : > { %419 = vrot.lane.b32.xlu1 %v1487_v45, %s1238_s5  ;;  %417 = vrot.lane.b32.xlu0 %v1454_v35, %s1238_s5  ;;  %v525_v61 = vsel %vm210_vm0, %v518_v2, 0.0  ;;  %v504_v48 = vrot.slane %v1574_v9, 1  ;;  %v1591_v52 = vsel %vm485_vm3, %v501_v42, %v502_v13  ;;  %v696_v20 = vrot.slane %v1490_v46, 2 }
  0x49   : > { %1121 = vpow2.f32 %v327_v41  ;;  %v530_v55 = vsel %vm210_vm0, %v517_v44, 0.0  ;;  %v532_v57 = vsel %vm210_vm0, %v519_v47, 0.0  ;;  %v526_v27 = vadd.f32 %v525_v61, %v524_v3 }
  0x4a   : > { %v531_v58 = vadd.f32 %v530_v55, %v529_v43  ;;  %v1597_v26 = vsel %vm485_vm3, %v502_v13, %v504_v48  ;;  %v520_v36 = vmul.f32 %v1591_v52, %v1451_v34  ;;  %v698_v59 = vrot.slane %v293_v11, 2 }
  0x4b   : > { %v521_v42 = vmul.f32 %v1597_v26, %v1514_v25  ;;  %v695_v60 = vrot.slane %v1457_v37, 2  ;;  %v701_v39 = vrot.slane %v1487_v45, 2  ;;  %v703_v62 = vrot.slane %v296_v21, 2 }
  0x4c   : > { %359 = vrot.lane.b32.xlu1 %v1497_v53, %s1237_s4  ;;  %357 = vrot.lane.b32.xlu0 %v1466_v1, %s1237_s4  ;;  %v533_v7 = vadd.f32 %v532_v57, %v531_v58  ;;  %v527_v8 = vsel %vm210_vm0, %v520_v36, 0.0  ;;  %v1611_v10 = vsel %vm694_vm4, %v696_v20, %v698_v59  ;;  %v700_v11 = vrot.slane %v1454_v35, 2 }
  0x4d   : > { %v534_v12 = vsel %vm210_vm0, %v521_v42, 0.0  ;;  %v528_v14 = vadd.f32 %v527_v8, %v526_v27  ;;  %v724_v15 = vmul.f32 %v1611_v10, %v1507_v18  ;;  %v1618_v16 = vsel %vm694_vm4, %v695_v60, %v696_v20 }
  0x4e   : > { %v535_v17 = vadd.f32 %v534_v12, %v533_v7  ;;  %v723_v21 = vmul.f32 %v1618_v16, %v1448_v33  ;;  %v1623_v22 = vsel %vm694_vm4, %v701_v39, %v703_v62  ;;  %v1626_v24 = vsel %vm694_vm4, %v700_v11, %v701_v39 }
  0x4f   : > { %v536_v50 = vmul.f32 1.442695, %v528_v14  ;;  %v738_v29 = vsel %vm210_vm0, %v724_v15, 0.0  ;;  %v726_v56 = vmul.f32 %v1623_v22, %v1502_v54  ;;  %v725_v30 = vmul.f32 %v1626_v24, %v1445_v32 }
  0x50   : > { %v1633_v31 = vpop.eup %1119  ;;  %423 = vrot.lane.b32.xlu1 %v1493_v49, %s1238_s5  ;;  %421 = vrot.lane.b32.xlu0 %v1460_v38, %s1238_s5  ;;  %v538_v0 = vmul.f32 1.442695, %v535_v17  ;;  %v731_v3 = vsel %vm210_vm0, %v723_v21, 0.0  ;;  %v706_v2 = vrot.slane %v1493_v49, 2  ;;  %v708_v13 = vrot.slane %v1548_v23, 2 }
  0x51   : > { %1123 = vpow2.f32 %v536_v50  ;;  %v739_v41 = vsel %vm210_vm0, %v726_v56, 0.0  ;;  %v732_v43 = vsel %vm210_vm0, %v725_v30, 0.0  ;;  %v705_v44 = vrot.slane %v1460_v38, 2 }
  0x52   : > { %1125 = vpow2.f32 %v538_v0  ;;  %v740_v47 = vadd.f32 %v739_v41, %v738_v29  ;;  %v733_v61 = vadd.f32 %v732_v43, %v731_v3  ;;  %v1646_v48 = vsel %vm694_vm4, %v706_v2, %v708_v13 }
  0x53   : > { %v728_v20 = vmul.f32 %v1646_v48, %v1510_v19  ;;  %v1651_v55 = vsel %vm694_vm4, %v705_v44, %v706_v2  ;;  %v711_v23 = vrot.slane %v1497_v53, 2  ;;  %v713_v57 = vrot.slane %v1574_v9, 2 }
  0x54   : > { %427 = vrot.lane.b32.xlu1 %v1497_v53, %s1238_s5  ;;  %425 = vrot.lane.b32.xlu0 %v1466_v1, %s1238_s5  ;;  %v727_v27 = vmul.f32 %v1651_v55, %v1463_v40  ;;  %v710_v58 = vrot.slane %v1466_v1, 2  ;;  %v1664_v36 = vmul.f32 %v1633_v31, %v1466_v1  ;;  %v1672_v9 = vmul.f32 %v1633_v31, %v1457_v37 }
  0x55   : > { %v741_v59 = vsel %vm210_vm0, %v728_v20, 0.0  ;;  %v1668_v42 = vsel %vm694_vm4, %v711_v23, %v713_v57  ;;  %v1676_v60 = vmul.f32 %v1633_v31, %v1454_v35 }
  0x56   : > { %v1678_v39 = vpop.eup %1121  ;;  %v742_v62 = vadd.f32 %v741_v59, %v740_v47  ;;  %v734_v7 = vsel %vm210_vm0, %v727_v27, 0.0  ;;  %v730_v1 = vmul.f32 %v1668_v42, %v1514_v25  ;;  %v1684_v8 = vsel %vm694_vm4, %v710_v58, %v711_v23 }
  0x57   : > { %v735_v11 = vadd.f32 %v734_v7, %v733_v61  ;;  %v729_v37 = vmul.f32 %v1684_v8, %v1451_v34  ;;  %v1690_v12 = vmul.f32 %v1678_v39, %v1497_v53  ;;  %v1694_v35 = vmul.f32 %v1678_v39, %v1490_v46 }
  0x58   : > { %560 = vrot.lane.b32.xlu1 %v1559_v51, %s1237_s4  ;;  %558 = vrot.lane.b32.xlu0 %v1528_v63, %s1237_s4  ;;  %v743_v14 = vsel %vm210_vm0, %v730_v1, 0.0  ;;  %v1703_v15 = vmul.f32 %v1678_v39, %v1487_v45  ;;  %v1707_v53 = vmul.f32 %v1633_v31, %v1460_v38  ;;  %v1711_v46 = vmul.f32 %v1678_v39, %v1493_v49 }
  0x59   : > { %v744_v17 = vadd.f32 %v743_v14, %v742_v62  ;;  %v736_v21 = vsel %vm210_vm0, %v729_v37, 0.0 }
  0x5a   : > { %v737_v50 = vadd.f32 %v736_v21, %v735_v11 }
  0x5b   : > { %v747_v29 = vmul.f32 1.442695, %v744_v17 }
  0x5c   : > { %564 = vrot.lane.b32.xlu1 %v1568_v4, %s1237_s4  ;;  %562 = vrot.lane.b32.xlu0 %v1531_v6, %s1237_s4  ;;  %v745_v45 = vmul.f32 1.442695, %v737_v50 }
  0x5d   : > { %1127 = vpow2.f32 %v747_v29 }
  0x5e   : > { %v1718_v56 = vpop.eup %1123  ;;  %1129 = vpow2.f32 %v745_v45 }
  0x5f   : > { %v1720_v38 = vpop.eup %1125  ;;  %v1724_v49 = vmul.f32 %v1718_v56, %v1591_v52  ;;  %v1740_v0 = vmul.f32 %v1718_v56, %v1528_v63  ;;  %v1748_v2 = vmul.f32 %v1718_v56, %v1531_v6  ;;  %v1756_v41 = vmul.f32 %v1718_v56, %v1552_v28 }
  0x60   : > { %568 = vrot.lane.b32.xlu1 %v1571_v5, %s1237_s4  ;;  %566 = vrot.lane.b32.xlu0 %v1552_v28, %s1237_s4  ;;  %v1732_v30 = vmul.f32 %v1720_v38, %v1597_v26  ;;  %v1744_v3 = vmul.f32 %v1720_v38, %v1559_v51  ;;  %v1752_v13 = vmul.f32 %v1720_v38, %v1568_v4 }
  0x64   : > { %628 = vrot.lane.b32.xlu1 %v1559_v51, %s1238_s5  ;;  %626 = vrot.lane.b32.xlu0 %v1528_v63, %s1238_s5  ;;  %v1760_v63 = vmul.f32 %v1720_v38, %v1571_v5 }
  0x68   : > { %632 = vrot.lane.b32.xlu1 %v1568_v4, %s1238_s5  ;;  %630 = vrot.lane.b32.xlu0 %v1531_v6, %s1238_s5 }
  0x6a   : > { %v1766_v51 = vpop.eup %1127 }
  0x6b   : > { %2227 = vst [vmem:[#allocation5_spill] sm:$0xff] %v1766_v51  ;;  %v1768_v43 = vpop.eup %1129  ;;  %v1772_v44 = vmul.f32 %v1766_v51, %v1668_v42 }
  0x6c   : > { %2228 = vst [vmem:[#allocation6_spill] sm:$0xff] %v1768_v43  ;;  %572 = vrot.lane.b32.xlu1 %v1597_v26, %s1237_s4  ;;  %570 = vrot.lane.b32.xlu0 %v1591_v52, %s1237_s4  ;;  %v1780_v4 = vmul.f32 %v1768_v43, %v1684_v8  ;;  %v1808_v6 = vmul.f32 %v1768_v43, %v1618_v16 }
  0x6d   : > { %2229 = vst [vmem:[#allocation7_spill] sm:$0xff] %v1772_v44 }
  0x6e   : > { %2230 = vst [vmem:[#allocation8_spill] sm:$0xff] %v1780_v4  ;;  %2231 = vst [vmem:[#allocation9_spill] sm:$0xff] %v1808_v6 }
  0x70   : > { %636 = vrot.lane.b32.xlu1 %v1571_v5, %s1238_s5  ;;  %634 = vrot.lane.b32.xlu0 %v1552_v28, %s1238_s5  ;;  %v1812_v28 = vmul.f32 %v1766_v51, %v1611_v10  ;;  %v1816_v5 = vmul.f32 %v1768_v43, %v1626_v24 }
  0x72   : > { %2232 = vst [vmem:[#allocation10_spill] sm:$0xff] %v1812_v28  ;;  %2233 = vst [vmem:[#allocation11_spill] sm:$0xff] %v1816_v5 }
  0x74   : > { %640 = vrot.lane.b32.xlu1 %v1597_v26, %s1238_s5  ;;  %638 = vrot.lane.b32.xlu0 %v1591_v52, %s1238_s5  ;;  %v1820_v52 = vmul.f32 %v1766_v51, %v1623_v22  ;;  %v1824_v26 = vmul.f32 %v1768_v43, %v1651_v55 }
  0x76   : > { %2234 = vst [vmem:[#allocation12_spill] sm:$0xff] %v1820_v52  ;;  %2235 = vst [vmem:[#allocation13_spill] sm:$0xff] %v1824_v26 }
  0x78   : > { %769 = vrot.lane.b32.xlu1 %v1611_v10, %s1237_s4  ;;  %767 = vrot.lane.b32.xlu0 %v1618_v16, %s1237_s4 }
  0x7c   : > { %773 = vrot.lane.b32.xlu1 %v1623_v22, %s1237_s4  ;;  %771 = vrot.lane.b32.xlu0 %v1626_v24, %s1237_s4 }
  0x80   : > { %777 = vrot.lane.b32.xlu1 %v1646_v48, %s1237_s4  ;;  %775 = vrot.lane.b32.xlu0 %v1651_v55, %s1237_s4 }
  0x84   : > { %837 = vrot.lane.b32.xlu1 %v1611_v10, %s1238_s5  ;;  %835 = vrot.lane.b32.xlu0 %v1618_v16, %s1238_s5  ;;  %v1828_v16 = vmul.f32 %v1766_v51, %v1646_v48 }
  0x86   : > { %2236 = vst [vmem:[#allocation14_spill] sm:$0xff] %v1828_v16 }
  0x88   : > { %841 = vrot.lane.b32.xlu1 %v1623_v22, %s1238_s5  ;;  %839 = vrot.lane.b32.xlu0 %v1626_v24, %s1238_s5 }
  0x8c   : > { %781 = vrot.lane.b32.xlu1 %v1668_v42, %s1237_s4  ;;  %779 = vrot.lane.b32.xlu0 %v1684_v8, %s1237_s4 }
  0x90   : > { %845 = vrot.lane.b32.xlu1 %v1646_v48, %s1238_s5  ;;  %843 = vrot.lane.b32.xlu0 %v1651_v55, %s1238_s5 }
  0x94   : > { %849 = vrot.lane.b32.xlu1 %v1668_v42, %s1238_s5  ;;  %847 = vrot.lane.b32.xlu0 %v1684_v8, %s1238_s5 }
  0xaa   : > { %v1846_v10 = vpop.permute.xlu1 %349  ;;  %v1848_v22 = vpop.permute.xlu0 %345 }
  0xab   : > { %v371_v24 = vmul.f32 %v1846_v10, %v1445_v32  ;;  %v369_v47 = vmul.f32 %v1848_v22, %v1448_v33 }
  0xad   : > { %v378_v61 = vsel %vm210_vm0, %v371_v24, 0.0  ;;  %v377_v48 = vsel %vm210_vm0, %v369_v47, 0.0 }
  0xae   : > { %v379_v20 = vadd.f32 %v378_v61, %v377_v48  ;;  %v1856_v55 = vpop.permute.xlu1 %351  ;;  %v1858_v23 = vpop.permute.xlu0 %347 }
  0xaf   : > { %v372_v57 = vmul.f32 %v1856_v55, %v1502_v54  ;;  %v370_v27 = vmul.f32 %v1858_v23, %v1507_v18 }
  0xb1   : > { %v385_v58 = vsel %vm210_vm0, %v372_v57, 0.0  ;;  %v384_v59 = vsel %vm210_vm0, %v370_v27, 0.0 }
  0xb2   : > { %v386_v42 = vadd.f32 %v385_v58, %v384_v59  ;;  %v1866_v62 = vpop.permute.xlu1 %355  ;;  %v1868_v7 = vpop.permute.xlu0 %353 }
  0xb3   : > { %v374_v1 = vmul.f32 %v1866_v62, %v1510_v19  ;;  %v373_v8 = vmul.f32 %v1868_v7, %v1463_v40 }
  0xb5   : > { %v387_v11 = vsel %vm210_vm0, %v374_v1, 0.0  ;;  %v380_v37 = vsel %vm210_vm0, %v373_v8, 0.0 }
  0xb6   : > { %v388_v14 = vadd.f32 %v387_v11, %v386_v42  ;;  %v381_v17 = vadd.f32 %v380_v37, %v379_v20  ;;  %v1876_v21 = vpop.permute.xlu1 %415  ;;  %v1878_v50 = vpop.permute.xlu0 %413 }
  0xb7   : > { %v438_v29 = vmul.f32 %v1876_v21, %v1507_v18  ;;  %v437_v45 = vmul.f32 %v1878_v50, %v1448_v33 }
  0xb9   : > { %v452_v20 = vsel %vm210_vm0, %v438_v29, 0.0  ;;  %v445_v57 = vsel %vm210_vm0, %v437_v45, 0.0 }
  0xba   : > { %v1884_v24 = vpop.permute.xlu1 %419  ;;  %v1886_v47 = vpop.permute.xlu0 %417 }
  0xbb   : > { %v440_v61 = vmul.f32 %v1884_v24, %v1502_v54  ;;  %v439_v48 = vmul.f32 %v1886_v47, %v1445_v32 }
  0xbd   : > { %v453_v27 = vsel %vm210_vm0, %v440_v61, 0.0  ;;  %v446_v58 = vsel %vm210_vm0, %v439_v48, 0.0 }
  0xbe   : > { %v454_v59 = vadd.f32 %v453_v27, %v452_v20  ;;  %v447_v42 = vadd.f32 %v446_v58, %v445_v57  ;;  %v360_v1 = vpop.permute.xlu1 %359  ;;  %v358_v8 = vpop.permute.xlu0 %357 }
  0xbf   : > { %v376_v11 = vmul.f32 %v360_v1, %v1514_v25  ;;  %v375_v37 = vmul.f32 %v358_v8, %v1451_v34 }
  0xc1   : > { %v389_v16 = vsel %vm210_vm0, %v376_v11, 0.0  ;;  %v382_v26 = vsel %vm210_vm0, %v375_v37, 0.0 }
  0xc2   : > { %v390_v52 = vadd.f32 %v389_v16, %v388_v14  ;;  %v383_v29 = vadd.f32 %v382_v26, %v381_v17  ;;  %v1900_v5 = vpop.permute.xlu1 %423  ;;  %v1902_v45 = vpop.permute.xlu0 %421 }
  0xc3   : > { %v442_v61 = vmul.f32 %v1900_v5, %v1510_v19  ;;  %v441_v48 = vmul.f32 %v1902_v45, %v1463_v40 }
  0xc4   : > { %v393_v20 = vmul.f32 1.442695, %v390_v52  ;;  %v391_v57 = vmul.f32 1.442695, %v383_v29 }
  0xc5   : > { %v455_v27 = vsel %vm210_vm0, %v442_v61, 0.0  ;;  %v448_v58 = vsel %vm210_vm0, %v441_v48, 0.0 }
  0xc6   : > { %1131 = vpow2.f32 %v393_v20  ;;  %v456_v11 = vadd.f32 %v455_v27, %v454_v59  ;;  %v449_v16 = vadd.f32 %v448_v58, %v447_v42  ;;  %v1910_v26 = vpop.permute.xlu1 %427  ;;  %v1912_v14 = vpop.permute.xlu0 %425 }
  0xc7   : > { %1133 = vpow2.f32 %v391_v57  ;;  %v444_v17 = vmul.f32 %v1910_v26, %v1514_v25  ;;  %v443_v37 = vmul.f32 %v1912_v14, %v1451_v34 }
  0xc9   : > { %v457_v52 = vsel %vm210_vm0, %v444_v17, 0.0  ;;  %v450_v29 = vsel %vm210_vm0, %v443_v37, 0.0 }
  0xca   : > { %v458_v61 = vadd.f32 %v457_v52, %v456_v11  ;;  %v451_v48 = vadd.f32 %v450_v29, %v449_v16  ;;  %v1920_v20 = vpop.permute.xlu1 %560  ;;  %v1922_v59 = vpop.permute.xlu0 %558 }
  0xcb   : > { %2237 = vst [vmem:[#allocation15_spill] sm:$0xff] %v1920_v20  ;;  %2238 = vst [vmem:[#allocation16_spill] sm:$0xff] %v1922_v59  ;;  %v583_v11 = vmul.f32 %v1920_v20, %v1507_v18  ;;  %v582_v16 = vmul.f32 %v1922_v59, %v1448_v33 }
  0xcc   : > { %v461_v42 = vmul.f32 1.442695, %v458_v61  ;;  %v459_v27 = vmul.f32 1.442695, %v451_v48 }
  0xcd   : > { %v597_v59 = vsel %vm210_vm0, %v583_v11, 0.0 }
  0xce   : > { %1135 = vpow2.f32 %v461_v42  ;;  %v1924_v57 = vpop.permute.xlu1 %564  ;;  %v1926_v58 = vpop.permute.xlu0 %562 }
  0xcf   : > { %2239 = vst [vmem:[#allocation17_spill] sm:$0xff] %v1924_v57  ;;  %2240 = vst [vmem:[#allocation18_spill] sm:$0xff] %v1926_v58  ;;  %1137 = vpow2.f32 %v459_v27  ;;  %v585_v28 = vmul.f32 %v1924_v57, %v1502_v54  ;;  %v584_v17 = vmul.f32 %v1926_v58, %v1445_v32 }
  0xd1   : > { %v598_v61 = vsel %vm210_vm0, %v585_v28, 0.0  ;;  %v591_v48 = vsel %vm210_vm0, %v584_v17, 0.0  ;;  %v590_v28 = vsel %vm210_vm0, %v582_v16, 0.0 }
  0xd2   : > { %v1936_v37 = vpop.permute.xlu1 %568  ;;  %v1938_v52 = vpop.permute.xlu0 %566  ;;  %v599_v57 = vadd.f32 %v598_v61, %v597_v59  ;;  %v592_v20 = vadd.f32 %v591_v48, %v590_v28 }
  0xd3   : > { %2241 = vst [vmem:[#allocation19_spill] sm:$0xff] %v1936_v37  ;;  %2242 = vst [vmem:[#allocation20_spill] sm:$0xff] %v1938_v52  ;;  %v1132_v29 = vpop.eup %1131  ;;  %v587_v42 = vmul.f32 %v1936_v37, %v1510_v19  ;;  %v586_v27 = vmul.f32 %v1938_v52, %v1463_v40 }
  0xd4   : > { %v1134_v6 = vpop.eup %1133  ;;  %v402_v4 = vmul.f32 %v1132_v29, %v360_v1  ;;  %v412_v44 = vadd.f32 %v1132_v29, %v1678_v39  ;;  %v396_v43 = vmul.f32 %v1132_v29, %v1858_v23  ;;  %v398_v51 = vmul.f32 %v1132_v29, %v1856_v55 }
  0xd5   : > { %v401_v58 = vmul.f32 %v1134_v6, %v358_v8  ;;  %v411_v17 = vadd.f32 %v1134_v6, %v1633_v31  ;;  %v395_v39 = vmul.f32 %v1134_v6, %v1848_v22  ;;  %v600_v55 = vsel %vm210_vm0, %v587_v42, 0.0 }
  0xd6   : > { %v410_v37 = vadd.f32 %v402_v4, %v1690_v12  ;;  %v1953_v52 = vpop.permute.xlu1 %628  ;;  %v1955_v1 = vpop.permute.xlu0 %626  ;;  %v593_v8 = vsel %vm210_vm0, %v586_v27, 0.0  ;;  %v397_v11 = vmul.f32 %v1134_v6, %v1846_v10  ;;  %v399_v31 = vmul.f32 %v1134_v6, %v1868_v7 }
  0xd7   : > { %v409_v23 = vadd.f32 %v401_v58, %v1664_v36  ;;  %v400_v12 = vmul.f32 %v1132_v29, %v1866_v62  ;;  %v403_v4 = vadd.f32 %v395_v39, %v1672_v9  ;;  %v404_v59 = vadd.f32 %v396_v43, %v1694_v35 }
  0xd8   : > { %v651_v16 = vmul.f32 %v1953_v52, %v1507_v18  ;;  %v650_v36 = vmul.f32 %v1955_v1, %v1448_v33  ;;  %v405_v22 = vadd.f32 %v397_v11, %v1676_v60  ;;  %v406_v58 = vadd.f32 %v398_v51, %v1703_v15 }
  0xd9   : > { %v407_v6 = vadd.f32 %v399_v31, %v1707_v53  ;;  %v408_v9 = vadd.f32 %v400_v12, %v1711_v46  ;;  %v601_v35 = vadd.f32 %v600_v55, %v599_v57  ;;  %v594_v43 = vadd.f32 %v593_v8, %v592_v20 }
  0xda   : > { %v1972_v61 = vpop.permute.xlu1 %632  ;;  %v1974_v10 = vpop.permute.xlu0 %630  ;;  %v665_v46 = vsel %vm210_vm0, %v651_v16, 0.0  ;;  %v658_v20 = vsel %vm210_vm0, %v650_v36, 0.0 }
  0xdb   : > { %v1136_v62 = vpop.eup %1135  ;;  %v653_v7 = vmul.f32 %v1972_v61, %v1502_v54  ;;  %v652_v29 = vmul.f32 %v1974_v10, %v1445_v32 }
  0xdc   : > { %v1138_v60 = vpop.eup %1137  ;;  %v470_v15 = vmul.f32 %v1136_v62, %v1910_v26  ;;  %v480_v51 = vadd.f32 %v1136_v62, %v412_v44  ;;  %v464_v48 = vmul.f32 %v1136_v62, %v1876_v21  ;;  %v466_v42 = vmul.f32 %v1136_v62, %v1884_v24 }
  0xdd   : > { %v469_v53 = vmul.f32 %v1138_v60, %v1912_v14  ;;  %v479_v57 = vadd.f32 %v1138_v60, %v411_v17  ;;  %v666_v28 = vsel %vm210_vm0, %v653_v7, 0.0  ;;  %v659_v39 = vsel %vm210_vm0, %v652_v29, 0.0 }
  0xde   : > { %v478_v27 = vadd.f32 %v470_v15, %v410_v37  ;;  %v1990_v55 = vpop.permute.xlu1 %572  ;;  %v1992_v26 = vpop.permute.xlu0 %570  ;;  %v1995_v44 = vadd.f32 %v1720_v38, %v480_v51  ;;  %v463_v8 = vmul.f32 %v1138_v60, %v1878_v50  ;;  %v465_v11 = vmul.f32 %v1138_v60, %v1886_v47 }
  0xdf   : > { %v477_v21 = vadd.f32 %v469_v53, %v409_v23  ;;  %v589_v24 = vmul.f32 %v1990_v55, %v1514_v25  ;;  %v588_v14 = vmul.f32 %v1992_v26, %v1451_v34  ;;  %v2002_v37 = vadd.f32 %v1718_v56, %v479_v57 }
  0xe0   : > { %v2005_v17 = vadd.f32 %v1732_v30, %v478_v27  ;;  %v467_v38 = vmul.f32 %v1138_v60, %v1902_v45  ;;  %v468_v16 = vmul.f32 %v1136_v62, %v1900_v5  ;;  %v471_v50 = vadd.f32 %v463_v8, %v403_v4 }
  0xe1   : > { %v602_v23 = vsel %vm210_vm0, %v589_v24, 0.0  ;;  %v2012_v31 = vadd.f32 %v1724_v49, %v477_v21  ;;  %v595_v12 = vsel %vm210_vm0, %v588_v14, 0.0  ;;  %v472_v29 = vadd.f32 %v464_v48, %v404_v59 }
  0xe2   : > { %v603_v56 = vadd.f32 %v602_v23, %v601_v35  ;;  %v596_v36 = vadd.f32 %v595_v12, %v594_v43  ;;  %v2016_v7 = vpop.permute.xlu1 %636  ;;  %v2018_v30 = vpop.permute.xlu0 %634  ;;  %v473_v49 = vadd.f32 %v465_v11, %v405_v22  ;;  %v474_v60 = vadd.f32 %v466_v42, %v406_v58 }
  0xe3   : > { %v655_v47 = vmul.f32 %v2016_v7, %v1510_v19  ;;  %v654_v45 = vmul.f32 %v2018_v30, %v1463_v40  ;;  %v475_v53 = vadd.f32 %v467_v38, %v407_v6  ;;  %v476_v5 = vadd.f32 %v468_v16, %v408_v9 }
  0xe4   : > { %v606_v15 = vmul.f32 1.442695, %v603_v56  ;;  %v604_v51 = vmul.f32 1.442695, %v596_v36  ;;  %v548_v43 = vadd.f32 %v1740_v0, %v471_v50  ;;  %v549_v4 = vadd.f32 %v1744_v3, %v472_v29 }
  0xe5   : > { %v668_v62 = vsel %vm210_vm0, %v655_v47, 0.0  ;;  %v661_v35 = vsel %vm210_vm0, %v654_v45, 0.0  ;;  %v667_v59 = vadd.f32 %v666_v28, %v665_v46  ;;  %v660_v48 = vadd.f32 %v659_v39, %v658_v20 }
  0xe6   : > { %1139 = vpow2.f32 %v606_v15  ;;  %v2028_v57 = vpop.permute.xlu1 %640  ;;  %v2030_v27 = vpop.permute.xlu0 %638  ;;  %v550_v22 = vadd.f32 %v1748_v2, %v473_v49  ;;  %v551_v0 = vadd.f32 %v1752_v13, %v474_v60  ;;  %v552_v42 = vadd.f32 %v1756_v41, %v475_v53  ;;  %v2243_v15 = vld [vmem:[#allocation15_spill] sm:$0xff]  ;;  %v2244_v53 = vld [vmem:[#allocation17_spill] sm:$0xff] }
  0xe7   : > { %1141 = vpow2.f32 %v604_v51  ;;  %v657_v58 = vmul.f32 %v2028_v57, %v1514_v25  ;;  %v656_v6 = vmul.f32 %v2030_v27, %v1451_v34  ;;  %v669_v9 = vadd.f32 %v668_v62, %v667_v59 }
  0xe8   : > { %v662_v3 = vadd.f32 %v661_v35, %v660_v48  ;;  %v553_v46 = vadd.f32 %v1760_v63, %v476_v5 }
  0xe9   : > { %v670_v20 = vsel %vm210_vm0, %v657_v58, 0.0  ;;  %v663_v28 = vsel %vm210_vm0, %v656_v6, 0.0 }
  0xea   : > { %v671_v2 = vadd.f32 %v670_v20, %v669_v9  ;;  %v664_v39 = vadd.f32 %v663_v28, %v662_v3  ;;  %v2042_v21 = vpop.permute.xlu1 %769  ;;  %v2044_v24 = vpop.permute.xlu0 %767 }
  0xeb   : > { %v792_v38 = vmul.f32 %v2042_v21, %v1507_v18  ;;  %v791_v23 = vmul.f32 %v2044_v24, %v1448_v33 }
  0xec   : > { %v674_v14 = vmul.f32 1.442695, %v671_v2  ;;  %v672_v8 = vmul.f32 1.442695, %v664_v39  ;;  %v2246_v39 = vld [vmem:[#allocation18_spill] sm:$0xff] }
  0xed   : > { %v806_v35 = vsel %vm210_vm0, %v792_v38, 0.0  ;;  %v799_v59 = vsel %vm210_vm0, %v791_v23, 0.0 }
  0xee   : > { %1143 = vpow2.f32 %v674_v14  ;;  %v2046_v13 = vpop.permute.xlu1 %773  ;;  %v2048_v11 = vpop.permute.xlu0 %771 }
  0xef   : > { %1145 = vpow2.f32 %v672_v8  ;;  %v794_v41 = vmul.f32 %v2046_v13, %v1502_v54  ;;  %v793_v63 = vmul.f32 %v2048_v11, %v1445_v32  ;;  %v2247_v8 = vld [vmem:[#allocation20_spill] sm:$0xff] }
  0xf1   : > { %v807_v36 = vsel %vm210_vm0, %v794_v41, 0.0  ;;  %v800_v50 = vsel %vm210_vm0, %v793_v63, 0.0  ;;  %v2248_v41 = vld [vmem:[#allocation19_spill] sm:$0xff] }
  0xf2   : > { %v2058_v12 = vpop.permute.xlu1 %777  ;;  %v2060_v16 = vpop.permute.xlu0 %775  ;;  %v808_v6 = vadd.f32 %v807_v36, %v806_v35  ;;  %v801_v9 = vadd.f32 %v800_v50, %v799_v59 }
  0xf3   : > { %v1140_v56 = vpop.eup %1139  ;;  %v796_v29 = vmul.f32 %v2058_v12, %v1510_v19  ;;  %v795_v47 = vmul.f32 %v2060_v16, %v1463_v40 }
  0xf4   : > { %v1142_v45 = vpop.eup %1141  ;;  %v615_v49 = vmul.f32 %v1140_v56, %v1990_v55  ;;  %v625_v60 = vadd.f32 %v1140_v56, %v1995_v44  ;;  %v609_v51 = vmul.f32 %v1140_v56, %v2243_v15  ;;  %v611_v5 = vmul.f32 %v1140_v56, %v2244_v53  ;;  %v2245_v44 = vld [vmem:[#allocation16_spill] sm:$0xff] }
  0xf5   : > { %v614_v62 = vmul.f32 %v1142_v45, %v1992_v26  ;;  %v624_v48 = vadd.f32 %v1142_v45, %v2002_v37  ;;  %v608_v20 = vmul.f32 %v1142_v45, %v2245_v44  ;;  %v809_v26 = vsel %vm210_vm0, %v796_v29, 0.0 }
  0xf6   : > { %v623_v58 = vadd.f32 %v615_v49, %v2005_v17  ;;  %v2077_v3 = vpop.permute.xlu1 %837  ;;  %v2079_v55 = vpop.permute.xlu0 %835  ;;  %v802_v2 = vsel %vm210_vm0, %v795_v47, 0.0  ;;  %v610_v14 = vmul.f32 %v1142_v45, %v2246_v39  ;;  %v612_v37 = vmul.f32 %v1142_v45, %v2247_v8 }
  0xf7   : > { %v622_v28 = vadd.f32 %v614_v62, %v2012_v31  ;;  %v613_v17 = vmul.f32 %v1140_v56, %v2248_v41  ;;  %v616_v63 = vadd.f32 %v608_v20, %v548_v43  ;;  %v617_v38 = vadd.f32 %v609_v51, %v549_v4  ;;  %v2251_v20 = vld [vmem:[#allocation7_spill] sm:$0xff] }
  0xf8   : > { %v860_v23 = vmul.f32 %v2077_v3, %v1507_v18  ;;  %v859_v36 = vmul.f32 %v2079_v55, %v1448_v33  ;;  %v618_v50 = vadd.f32 %v610_v14, %v550_v22  ;;  %v619_v31 = vadd.f32 %v611_v5, %v551_v0  ;;  %v2252_v14 = vld [vmem:[#allocation8_spill] sm:$0xff] }
  0xf9   : > { %v620_v47 = vadd.f32 %v612_v37, %v552_v42  ;;  %v621_v15 = vadd.f32 %v613_v17, %v553_v46  ;;  %v810_v45 = vadd.f32 %v809_v26, %v808_v6  ;;  %v803_v62 = vadd.f32 %v802_v2, %v801_v9 }
  0xfa   : > { %v2092_v49 = vpop.permute.xlu1 %841  ;;  %v2094_v29 = vpop.permute.xlu0 %839  ;;  %v874_v46 = vsel %vm210_vm0, %v860_v23, 0.0  ;;  %v867_v51 = vsel %vm210_vm0, %v859_v36, 0.0 }
  0xfb   : > { %v1144_v53 = vpop.eup %1143  ;;  %v862_v43 = vmul.f32 %v2092_v49, %v1502_v54  ;;  %v861_v18 = vmul.f32 %v2094_v29, %v1445_v32 }
  0xfc   : > { %v1146_v4 = vpop.eup %1145  ;;  %v683_v33 = vmul.f32 %v1144_v53, %v2028_v57  ;;  %v693_v22 = vadd.f32 %v1144_v53, %v625_v60  ;;  %v677_v0 = vmul.f32 %v1144_v53, %v1953_v52  ;;  %v679_v56 = vmul.f32 %v1144_v53, %v1972_v61  ;;  %v2249_v57 = vld [vmem:[#allocation5_spill] sm:$0xff] }
  0xfd   : > { %v682_v42 = vmul.f32 %v1146_v4, %v2030_v27  ;;  %v692_v5 = vadd.f32 %v1146_v4, %v624_v48  ;;  %v875_v54 = vsel %vm210_vm0, %v862_v43, 0.0  ;;  %v868_v32 = vsel %vm210_vm0, %v861_v18, 0.0  ;;  %v2250_v27 = vld [vmem:[#allocation6_spill] sm:$0xff] }
  0xfe   : > { %v691_v35 = vadd.f32 %v683_v33, %v623_v58  ;;  %v782_v59 = vpop.permute.xlu1 %781  ;;  %v780_v6 = vpop.permute.xlu0 %779  ;;  %v766_v60 = vadd.f32 %v2249_v57, %v693_v22  ;;  %v676_v48 = vmul.f32 %v1146_v4, %v1955_v1  ;;  %v678_v58 = vmul.f32 %v1146_v4, %v1974_v10 }
  0xff   : > { %v690_v9 = vadd.f32 %v682_v42, %v622_v28  ;;  %v798_v52 = vmul.f32 %v782_v59, %v1514_v25  ;;  %v797_v61 = vmul.f32 %v780_v6, %v1451_v34  ;;  %v765_v44 = vadd.f32 %v2250_v27, %v692_v5 }
 0x100   : > { %v764_v26 = vadd.f32 %v2251_v20, %v691_v35  ;;  %v680_v2 = vmul.f32 %v1146_v4, %v2018_v30  ;;  %v681_v37 = vmul.f32 %v1144_v53, %v2016_v7  ;;  %v684_v43 = vadd.f32 %v676_v48, %v616_v63  ;;  %v2254_v63 = vld [vmem:[#allocation10_spill] sm:$0xff] }
 0x101   : > { %v811_v39 = vsel %vm210_vm0, %v798_v52, 0.0  ;;  %v763_v8 = vadd.f32 %v2252_v14, %v690_v9  ;;  %v804_v28 = vsel %vm210_vm0, %v797_v61, 0.0  ;;  %v685_v1 = vadd.f32 %v677_v0, %v617_v38  ;;  %v2257_v61 = vld [vmem:[#allocation13_spill] sm:$0xff]  ;;  %v2258_v20 = vld [vmem:[#allocation14_spill] sm:$0xff] }
 0x102   : > { %v812_v41 = vadd.f32 %v811_v39, %v810_v45  ;;  %v805_v17 = vadd.f32 %v804_v28, %v803_v62  ;;  %v2120_v23 = vpop.permute.xlu1 %845  ;;  %v2122_v36 = vpop.permute.xlu0 %843  ;;  %v686_v18 = vadd.f32 %v678_v58, %v618_v50  ;;  %v687_v4 = vadd.f32 %v679_v56, %v619_v31  ;;  %v2253_v62 = vld [vmem:[#allocation9_spill] sm:$0xff] }
 0x103   : > { %v864_v10 = vmul.f32 %v2120_v23, %v1510_v19  ;;  %v863_v30 = vmul.f32 %v2122_v36, %v1463_v40  ;;  %v688_v42 = vadd.f32 %v680_v2, %v620_v47  ;;  %v689_v7 = vadd.f32 %v681_v37, %v621_v15  ;;  %v2255_v40 = vld [vmem:[#allocation11_spill] sm:$0xff]  ;;  %v2256_v15 = vld [vmem:[#allocation12_spill] sm:$0xff] }
 0x104   : > { %v815_v33 = vmul.f32 1.442695, %v812_v41  ;;  %v813_v22 = vmul.f32 1.442695, %v805_v17  ;;  %v757_v5 = vadd.f32 %v2253_v62, %v684_v43  ;;  %v758_v38 = vadd.f32 %v2254_v63, %v685_v1 }
 0x105   : > { %v877_v53 = vsel %vm210_vm0, %v864_v10, 0.0  ;;  %v870_v45 = vsel %vm210_vm0, %v863_v30, 0.0  ;;  %v876_v0 = vadd.f32 %v875_v54, %v874_v46  ;;  %v869_v35 = vadd.f32 %v868_v32, %v867_v51 }
 0x106   : > { %1147 = vpow2.f32 %v815_v33  ;;  %v850_v19 = vpop.permute.xlu1 %849  ;;  %v848_v57 = vpop.permute.xlu0 %847  ;;  %v759_v50 = vadd.f32 %v2255_v40, %v686_v18  ;;  %v760_v56 = vadd.f32 %v2256_v15, %v687_v4  ;;  %v761_v27 = vadd.f32 %v2257_v61, %v688_v42 }
 0x107   : > { %1149 = vpow2.f32 %v813_v22  ;;  %v866_v31 = vmul.f32 %v850_v19, %v1514_v25  ;;  %v865_v47 = vmul.f32 %v848_v57, %v1451_v34  ;;  %v878_v9 = vadd.f32 %v877_v53, %v876_v0 }
 0x108   : > { %v871_v52 = vadd.f32 %v870_v45, %v869_v35  ;;  %v762_v48 = vadd.f32 %v2258_v20, %v689_v7 }
 0x109   : > { %v879_v46 = vsel %vm210_vm0, %v866_v31, 0.0  ;;  %v872_v51 = vsel %vm210_vm0, %v865_v47, 0.0 }
 0x10a   : > { %v880_v54 = vadd.f32 %v879_v46, %v878_v9  ;;  %v873_v32 = vadd.f32 %v872_v51, %v871_v52 }
 0x10c   : > { %v883_v58 = vmul.f32 1.442695, %v880_v54  ;;  %v881_v2 = vmul.f32 1.442695, %v873_v32 }
 0x10e   : > { %1151 = vpow2.f32 %v883_v58 }
 0x10f   : > { %1153 = vpow2.f32 %v881_v2 }
 0x113   : > { %v1148_v25 = vpop.eup %1147 }
 0x114   : > { %v1150_v34 = vpop.eup %1149  ;;  %v824_v39 = vmul.f32 %v1148_v25, %v782_v59  ;;  %v834_v14 = vadd.f32 %v1148_v25, %v766_v60  ;;  %v818_v28 = vmul.f32 %v1148_v25, %v2042_v21  ;;  %v820_v37 = vmul.f32 %v1148_v25, %v2046_v13 }
 0x115   : > { %v823_v41 = vmul.f32 %v1150_v34, %v780_v6  ;;  %v833_v17 = vadd.f32 %v1150_v34, %v765_v44  ;;  %v817_v43 = vmul.f32 %v1150_v34, %v2044_v24  ;;  %v819_v1 = vmul.f32 %v1150_v34, %v2048_v11 }
 0x116   : > { %v832_v10 = vadd.f32 %v824_v39, %v764_v26  ;;  %v821_v30 = vmul.f32 %v1150_v34, %v2060_v16  ;;  %v822_v18 = vmul.f32 %v1148_v25, %v2058_v12  ;;  %v826_v4 = vadd.f32 %v818_v28, %v758_v38 }
 0x117   : > { %v831_v33 = vadd.f32 %v823_v41, %v763_v8  ;;  %v825_v22 = vadd.f32 %v817_v43, %v757_v5  ;;  %v827_v59 = vadd.f32 %v819_v1, %v759_v50  ;;  %v828_v60 = vadd.f32 %v820_v37, %v760_v56 }
 0x118   : > { %v829_v42 = vadd.f32 %v821_v30, %v761_v27  ;;  %v830_v21 = vadd.f32 %v822_v18, %v762_v48 }
 0x11b   : > { %v1152_v7 = vpop.eup %1151 }
 0x11c   : > { %v1154_v13 = vpop.eup %1153  ;;  %v892_v6 = vmul.f32 %v1152_v7, %v850_v19  ;;  %v902_v44 = vadd.f32 %v1152_v7, %v834_v14  ;;  %v886_v24 = vmul.f32 %v1152_v7, %v2077_v3  ;;  %v888_v11 = vmul.f32 %v1152_v7, %v2092_v49 }
 0x11d   : > { %v891_v26 = vmul.f32 %v1154_v13, %v848_v57  ;;  %v901_v16 = vadd.f32 %v1154_v13, %v833_v17  ;;  %v885_v12 = vmul.f32 %v1154_v13, %v2079_v55  ;;  %v887_v8 = vmul.f32 %v1154_v13, %v2094_v29 }
 0x11e   : > { %v900_v53 = vadd.f32 %v892_v6, %v832_v10  ;;  %1155 = vrcp.f32 %v902_v44  ;;  %v889_v45 = vmul.f32 %v1154_v13, %v2122_v36  ;;  %v890_v62 = vmul.f32 %v1152_v7, %v2120_v23 }
 0x11f   : > { %v899_v5 = vadd.f32 %v891_v26, %v831_v33  ;;  %1157 = vrcp.f32 %v901_v16  ;;  %v893_v63 = vadd.f32 %v885_v12, %v825_v22  ;;  %v894_v38 = vadd.f32 %v886_v24, %v826_v4 }
 0x120   : > { %v895_v3 = vadd.f32 %v887_v8, %v827_v59  ;;  %v896_v49 = vadd.f32 %v888_v11, %v828_v60  ;;  %v897_v0 = vadd.f32 %v889_v45, %v829_v42  ;;  %v898_v35 = vadd.f32 %v890_v62, %v830_v21 }
 0x12b   : > { %v1156_v55 = vpop.eup %1155 }
 0x12c   : > { %v1158_v29 = vpop.eup %1157  ;;  %v912_v19 = vmul.f32 %v1156_v55, %v900_v53  ;;  %v906_v57 = vmul.f32 %v1156_v55, %v894_v38  ;;  %v908_v36 = vmul.f32 %v1156_v55, %v896_v49  ;;  %v910_v40 = vmul.f32 %v1156_v55, %v898_v35 }
 0x12d   : > { %v911_v23 = vmul.f32 %v1158_v29, %v899_v5  ;;  %v905_v50 = vmul.f32 %v1158_v29, %v893_v63  ;;  %v907_v31 = vmul.f32 %v1158_v29, %v895_v3  ;;  %v909_v47 = vmul.f32 %v1158_v29, %v897_v0 }
 0x12e   : > { %920 = vst.msk [vmem:[%s176_s15 + $0x38] sm:$0xff] %vm210_vm0, %v912_v19  ;;  %914 = vst.msk [vmem:[%s176_s15 + $0x8] sm:$0xff] %vm210_vm0, %v906_v57 }
 0x12f   : > { %916 = vst.msk [vmem:[%s176_s15 + $0x18] sm:$0xff] %vm210_vm0, %v908_v36  ;;  %918 = vst.msk [vmem:[%s176_s15 + $0x28] sm:$0xff] %vm210_vm0, %v910_v40 }
 0x130   : > { %919 = vst.msk [vmem:[%s176_s15 + $0x30] sm:$0xff] %vm210_vm0, %v911_v23  ;;  %913 = vst.msk [vmem:[%s176_s15] sm:$0xff] %vm210_vm0, %v905_v50 }
 0x131   : > { %915 = vst.msk [vmem:[%s176_s15 + $0x10] sm:$0xff] %vm210_vm0, %v907_v31  ;;  %917 = vst.msk [vmem:[%s176_s15 + $0x20] sm:$0xff] %vm210_vm0, %v909_v47 }
 0x132   : > { %1172 = shalt.err (!%p1169_p5)
}
 0x133   : > { %s1173_s28 = scalar_lea.hbm %s2157_s23, 1024  ;;  %s1177_s3 = scalar_lea.hbm %s2216_s2, 2048 }
 0x134   : > { %p1174_p6 = scmp.ne.s32.totalorder %s2157_s23, %s1173_s28  ;;  %p1178_p10 = scmp.lt.s32.totalorder %s2157_s23, %s2216_s2 }
 0x135   : > { %p1179_p11 = scmp.lt.s32.totalorder %s1177_s3, %s1173_s28 }
 0x136   : > { %p1175_p7 = pnand %p1174_p6, %p1297_p4 }
 0x137   : > { %p1180_p12 = por %p1179_p11, %p1178_p10 }
 0x138   : > { %p1176_p9 = pneg %p1175_p7 }
 0x13a   : > { %p1181_p13 = pnand %p1180_p12, %p1176_p9 }
 0x13c   : > { %1184 = shalt.err (!%p1181_p13)
}
 0x13d   : > { %s1240_s6 = smov 128   ;;  %s1241_s7 = smov 8  }
 0x13e   : > { %1050 = dma.vmem_to_hbm [thread:$0]  (%p1297_p4), %s2159_s16, 1024, %s2157_s23, %s2169_s12, %s1240_s6, %s1240_s6, %s1241_s7  }
 0x13f PF: > { %p1056_p0 = scmp.ge.s32.totalorder %s1235_s14, 2  ;;  %s952_s8 = sand.u32 1, %s1215_s9  }
 0x140   : > { %s953_s15 = scalar_lea.sflag [#allocation3], %s952_s8 }
 0x141   : > { %p1053_p1 = pnand %p1056_p0, %p1304_p8 }
 0x143   : > { %p1054_p2 = pneg %p1053_p1 }
 0x145   : > { %1210 = dma.done.wait (%p1054_p2), %s953_s15, 1024  }
 0x146   : > { %1212 = vsyncadd (%p1054_p2), %s953_s15, 4294966272  ;;  %s15_s14 = sadd.s32 1, %s1235_s14   ;;  %s2259_s9 = smov %s1219_s10 }
 0x147   : > { %p12_p3 = scmp.ge.s32.totalorder %s15_s14, 4   ;;  %s2260_s10 = smov %s1223_s11 }
 0x148   : > { %s2261_s11 = smov %s1310_s22  ;;  %s2262_s12 = smov %s1231_s13 }
 0x149   : > { %s2263_s13 = smov %s2265_s17  ;;  %14 = sbr.rel (!%p12_p3) target bundleno = 4 (0x4), region = 67 }
 0x14e   :  { %958 = vsyncpa [#allocation3], 1 }
 0x14f   :  { %960 = vsyncpa [#allocation3 + $0x1], 1 }

// kernel: tpu_custom_call.1
= control target key start
LH: loop header
LB: loop body
LE: loop exit
PB: predicated region body
PF: predicated region fallthrough
CT: control target
= control target key end

     0   :  { %7 = vsyncpa [#allocation3], 0  ;;  %s2211_s0 = inlined_call_operand.vmem [shape: f32[2,4,16,16], index: 0, kind: input, shape index: {}]   ;;  %s2212_s1 = inlined_call_operand.vmem [shape: f32[2,4,18,18], index: 1, kind: input, shape index: {}]   ;;  %s2213_s2 = inlined_call_operand.hbm [shape: f32[2,4,16,16], index: 2, kind: output, shape index: {}]  }
   0x1   :  { %9 = vsyncpa [#allocation3 + $0x1], 0  ;;  %s1254_s9 = smov 0   ;;  %s1256_s10 = smov 0  }
   0x2   :  { %s1258_s11 = smov 0   ;;  %s1260_s12 = smov 0  }
   0x3   :  { %s1262_s13 = smov 0   ;;  %s1264_s14 = smov 0  }
   0x4 LB: > { %s1030_s15 = sadd.s32 4294967295, %s1232_s14   ;;  %s1031_s16 = sadd.s32 4294967294, %s1232_s14   ;;  %s1232_s14 = sphi %s1264_s14, %s15_s14   ;;  %s1228_s13 = sphi %s1262_s13, %s2260_s13   ;;  %s1224_s12 = sphi %s1260_s12, %s2259_s12   ;;  %s1220_s11 = sphi %s1258_s11, %s2258_s11   ;;  %s1216_s10 = sphi %s1256_s10, %s2257_s10   ;;  %s1212_s9 = sphi %s1254_s9, %s2256_s9  }
   0x5   : > { %s27_s17 = sadd.s32 1, %s1228_s13  ;;  %s90_s18 = sadd.s32 1, %s1220_s11 }
   0x6   : > { %p29_p0 = scmp.ge.s32.totalorder %s27_s17, 2  ;;  %p100_p1 = scmp.ne.s32.totalorder %s1220_s11, %s1216_s10 }
   0x7   : > { %p101_p2 = scmp.eq.s32.totalorder %s1030_s15, 1  ;;  %p106_p3 = scmp.ne.s32.totalorder %s1216_s10, %s1212_s9 }
   0x8   : > { %s2262_s17 = smov (%p29_p0, %s27_s17), 0  ;;  %p107_p5 = scmp.eq.s32.totalorder %s1031_s16, 1 }
   0x9   : > { %p1294_p4 = por %p101_p2, %p100_p1  ;;  %s85_s20 = ssub.s32 %s1228_s13, %s2262_s17 }
   0xa   : > { %p1034_p6 = scmp.ge.s32.totalorder %s1232_s14, 1  ;;  %p88_p7 = scmp.eq.s32.totalorder %s85_s20, 0 }
   0xb   : > { %p1301_p8 = por %p107_p5, %p106_p3  ;;  %p146_p9 = scmp.lt.s32.totalorder %s1232_s14, 3 }
   0xc   : > { %s1307_s22 = scalar_select %p88_p7, %s1220_s11, %s90_s18  }
   0xd   : > { %p147_p10 = pnand %p1034_p6, %p146_p9 }
   0xf   : > { %150 = sbr.rel (%p147_p10) target bundleno = 319 (0x13f), region = 28 }
  0x14   : > { %p178_p11 = scmp.lt.s32.totalorder %s1224_s12, 1  ;;  %vm210_vm0 = vcmask 130048   ;;  %vm262_vm1 = vcmask 146432   ;;  %vm277_vm2 = vcmask 140288   ;;  %vm485_vm3 = vcmask 1046528   ;;  %s1234_s4 = smov 127  }
  0x15   : > { %vm694_vm4 = vcmask 1045504   ;;  %s1235_s5 = smov 126   ;;  %s174_s6 = sand.u32 1, %s1216_s10  }
  0x16   : > { %s179_s23 = scalar_select %p178_p11, %s1224_s12, 1 }
  0x17   : > { %s1035_s7 = sshll.u32 %s174_s6, 6  ;;  %s1045_s8 = sshll.u32 %s1224_s12, 10 }
  0x18   : > { %s1046_s24 = smul.u32 96, %s179_s23  ;;  %s1044_s25 = sshll.u32 %s179_s23, 6 }
  0x19   : > { %s1314_s28 = scalar_lea.vmem %s2211_s0, %s1044_s25  ;;  %s176_s15 = scalar_lea.vmem [#allocation2], %s1035_s7 }
  0x1a   : > { %s1319_s3 = scalar_lea.vmem %s2212_s1, %s1046_s24  ;;  %v1322_v0 = vld [vmem:[%s1314_s28] sm:$0xff]  ;;  %v1325_v1 = vld [vmem:[%s1314_s28 + $0x10] sm:$0xff]  ;;  %v1379_v26 = vld [vmem:[%s1314_s28 + $0x8] sm:$0xff]  ;;  %s937_s16 = sshll.u32 %s176_s15, 4  ;;  %s2156_s16 = int_to_ptr.vmem [resolvable:$true] %s937_s16 }
  0x1b   : > { %v1328_v2 = vld [vmem:[%s1314_s28 + $0x20] sm:$0xff]  ;;  %v1334_v4 = vld [vmem:[%s1319_s3 + $0x18] sm:$0xff]  ;;  %v1337_v5 = vld [vmem:[%s1319_s3 + $0x30] sm:$0xff]  ;;  %v202_v6 = vmul.f32 %v1322_v0, %v1322_v0  ;;  %v204_v7 = vmul.f32 %v1325_v1, %v1325_v1  ;;  %v203_v40 = vmul.f32 %v1379_v26, %v1379_v26  ;;  %s2154_s23 = scalar_lea.hbm %s2213_s2, %s1045_s8  ;;  %s2166_s12 = scalar_lea.sflag [#allocation3], %s174_s6 }
  0x1c   : > { %v1331_v3 = vld [vmem:[%s1319_s3] sm:$0xff]  ;;  %v206_v8 = vmul.f32 %v1328_v2, %v1328_v2  ;;  %v1346_v9 = vld [vmem:[%s1319_s3 + $0x48] sm:$0xff]  ;;  %v253_v11 = vmul.f32 %v1334_v4, %v1334_v4  ;;  %v256_v12 = vmul.f32 %v1337_v5, %v1337_v5  ;;  %v1355_v13 = vld [vmem:[%s1314_s28 + $0x30] sm:$0xff]  ;;  %s1156_s24 = scalar_lea.vmem %s2156_s16, 1024  ;;  %s1236_s25 = smov [#allocation2]  }
  0x1d   : > { %v250_v10 = vmul.f32 %v1331_v3, %v1331_v3  ;;  %v259_v14 = vmul.f32 %v1346_v9, %v1346_v9  ;;  %v208_v15 = vmul.f32 %v1355_v13, %v1355_v13  ;;  %v211_v16 = vsel %vm210_vm0, %v202_v6, 0.0  ;;  %v1364_v18 = vld [vmem:[%s1319_s3 + $0x8] sm:$0xff]  ;;  %v1367_v19 = vld [vmem:[%s1319_s3 + $0x20] sm:$0xff]  ;;  %v1370_v20 = vld [vmem:[%s1319_s3 + $0x38] sm:$0xff]  ;;  %p1157_p12 = scmp.ne.s32.totalorder %s2156_s16, %s1156_s24  ;;  %s1160_s26 = sshll.u32 %s1236_s25, 4  ;;  %s1161_s26 = int_to_ptr.vmem [resolvable:$false] %s1160_s26 }
  0x1e   : > { %v212_v17 = vsel %vm210_vm0, %v204_v7, 0.0  ;;  %v264_v22 = vsel %vm262_vm1, %v253_v11, 0.0  ;;  %v266_v23 = vsel %vm262_vm1, %v256_v12, 0.0  ;;  %v1376_v25 = vld [vmem:[%s1319_s3 + $0x50] sm:$0xff]  ;;  %v1382_v27 = vld [vmem:[%s1314_s28 + $0x18] sm:$0xff]  ;;  %v214_v30 = vsel %vm210_vm0, %v206_v8, 0.0  ;;  %p1163_p1 = scmp.lt.s32.totalorder %s2156_s16, %s1161_s26 }
  0x1f   : > { %v263_v21 = vsel %vm262_vm1, %v250_v10, 0.0  ;;  %v213_v24 = vadd.f32 %v212_v17, %v211_v16  ;;  %v268_v29 = vsel %vm262_vm1, %v259_v14, 0.0  ;;  %v216_v31 = vsel %vm210_vm0, %v208_v15, 0.0  ;;  %v1394_v36 = vld [vmem:[%s1314_s28 + $0x28] sm:$0xff]  ;;  %v1399_v39 = vld [vmem:[%s1314_s28 + $0x38] sm:$0xff]  ;;  %p1158_p13 = pnand %p1157_p12, %p1294_p4  ;;  %s1162_s27 = scalar_lea.vmem %s1161_s26, 2048 }
  0x20   : > { %v265_v28 = vadd.f32 %v264_v22, %v263_v21  ;;  %v251_v33 = vmul.f32 %v1364_v18, %v1364_v18  ;;  %v254_v34 = vmul.f32 %v1367_v19, %v1367_v19  ;;  %v257_v35 = vmul.f32 %v1370_v20, %v1370_v20  ;;  %v1412_v50 = vld [vmem:[%s1319_s3 + $0x10] sm:$0x3]  ;;  %v1415_v51 = vld [vmem:[%s1319_s3 + $0x28] sm:$0x3]  ;;  %v1422_v56 = vld [vmem:[%s1319_s3 + $0x40] sm:$0x3]  ;;  %p1164_p2 = scmp.lt.s32.totalorder %s1162_s27, %s1156_s24 }
  0x21   : > { %v215_v32 = vadd.f32 %v214_v30, %v213_v24  ;;  %v260_v38 = vmul.f32 %v1376_v25, %v1376_v25  ;;  %v205_v41 = vmul.f32 %v1382_v27, %v1382_v27  ;;  %v207_v49 = vmul.f32 %v1394_v36, %v1394_v36  ;;  %v1426_v61 = vld [vmem:[%s1319_s3 + $0x58] sm:$0x3]  ;;  %p1159_p0 = pneg %p1158_p13 }
  0x22   : > { %v267_v37 = vadd.f32 %v266_v23, %v265_v28  ;;  %v270_v43 = vsel %vm262_vm1, %v251_v33, 0.0  ;;  %v271_v44 = vsel %vm262_vm1, %v254_v34, 0.0  ;;  %v273_v45 = vsel %vm262_vm1, %v257_v35, 0.0  ;;  %p1165_p3 = por %p1164_p2, %p1163_p1 }
  0x23   : > { %v217_v42 = vadd.f32 %v216_v31, %v215_v32  ;;  %v272_v47 = vadd.f32 %v271_v44, %v270_v43  ;;  %v275_v48 = vsel %vm262_vm1, %v260_v38, 0.0  ;;  %v209_v53 = vmul.f32 %v1399_v39, %v1399_v39 }
  0x24   : > { %v269_v46 = vadd.f32 %v268_v29, %v267_v37  ;;  %v218_v54 = vsel %vm210_vm0, %v203_v40, 0.0  ;;  %v219_v55 = vsel %vm210_vm0, %v205_v41, 0.0  ;;  %v221_v60 = vsel %vm210_vm0, %v207_v49, 0.0  ;;  %p1166_p5 = pnand %p1165_p3, %p1159_p0 }
  0x25   : > { %v225_v52 = vmax.f32 %v217_v42, 1e-24  ;;  %v274_v58 = vadd.f32 %v273_v45, %v272_v47  ;;  %v220_v59 = vadd.f32 %v219_v55, %v218_v54  ;;  %v223_v62 = vsel %vm210_vm0, %v209_v53, 0.0 }
  0x26   : > { %v285_v57 = vmax.f32 %v269_v46, 1e-24  ;;  %v252_v63 = vmul.f32 %v1412_v50, %v1412_v50  ;;  %v255_v6 = vmul.f32 %v1415_v51, %v1415_v51  ;;  %v258_v10 = vmul.f32 %v1422_v56, %v1422_v56 }
  0x27   : > { %1106 = vrsqrt.f32 %v225_v52  ;;  %v276_v7 = vadd.f32 %v275_v48, %v274_v58  ;;  %v222_v8 = vadd.f32 %v221_v60, %v220_v59  ;;  %v261_v11 = vmul.f32 %v1426_v61, %v1426_v61 }
  0x28   : > { %1108 = vrsqrt.f32 %v285_v57  ;;  %v278_v12 = vsel %vm277_vm2, %v252_v63, 0.0  ;;  %v279_v14 = vsel %vm277_vm2, %v255_v6, 0.0  ;;  %v281_v21 = vsel %vm277_vm2, %v258_v10, 0.0 }
  0x29   : > { %v286_v15 = vmax.f32 %v276_v7, 1e-24  ;;  %v224_v16 = vadd.f32 %v223_v62, %v222_v8  ;;  %v280_v17 = vadd.f32 %v279_v14, %v278_v12  ;;  %v283_v22 = vsel %vm277_vm2, %v261_v11, 0.0 }
  0x2b   : > { %1110 = vrsqrt.f32 %v286_v15  ;;  %v226_v23 = vmax.f32 %v224_v16, 1e-24  ;;  %v282_v24 = vadd.f32 %v281_v21, %v280_v17 }
  0x2d   : > { %1112 = vrsqrt.f32 %v226_v23  ;;  %v284_v28 = vadd.f32 %v283_v22, %v282_v24 }
  0x2f   : > { %v287_v29 = vmax.f32 %v284_v28, 1e-24 }
  0x31   : > { %1114 = vrsqrt.f32 %v287_v29 }
  0x34   : > { %v1107_v30 = vpop.eup %1106 }
  0x35   : > { %v1109_v31 = vpop.eup %1108  ;;  %v1442_v32 = vmul.f32 %v1107_v30, %v1325_v1  ;;  %v1445_v33 = vmul.f32 %v1107_v30, %v1322_v0  ;;  %v1448_v34 = vmul.f32 %v1107_v30, %v1355_v13  ;;  %v1460_v40 = vmul.f32 %v1107_v30, %v1328_v2 }
  0x36   : > { %v1451_v35 = vmul.f32 %v1109_v31, %v1334_v4  ;;  %v1454_v37 = vmul.f32 %v1109_v31, %v1331_v3  ;;  %v1457_v38 = vmul.f32 %v1109_v31, %v1337_v5  ;;  %v1463_v1 = vmul.f32 %v1109_v31, %v1346_v9 }
  0x38   : > { %349 = vrot.lane.b32.xlu1 %v1451_v35, %s1234_s4  ;;  %v305_v0 = vmul.f32 %v1451_v35, %v1442_v32  ;;  %345 = vrot.lane.b32.xlu0 %v1454_v37, %s1234_s4  ;;  %v303_v3 = vmul.f32 %v1454_v37, %v1445_v33  ;;  %v307_v2 = vmul.f32 %v1457_v38, %v1460_v40  ;;  %v486_v4 = vrot.slane %v1454_v37, 1  ;;  %v1111_v5 = vpop.eup %1110 }
  0x39   : > { %v309_v9 = vmul.f32 %v1463_v1, %v1448_v34  ;;  %v491_v13 = vrot.slane %v1451_v35, 1  ;;  %v496_v41 = vrot.slane %v1457_v38, 1  ;;  %v501_v42 = vrot.slane %v1463_v1, 1 }
  0x3a   : > { %v312_v43 = vsel %vm210_vm0, %v305_v0, 0.0  ;;  %v311_v44 = vsel %vm210_vm0, %v303_v3, 0.0  ;;  %v1484_v45 = vmul.f32 %v1111_v5, %v1367_v19  ;;  %v1487_v46 = vmul.f32 %v1111_v5, %v1364_v18  ;;  %v1113_v47 = vpop.eup %1112 }
  0x3b   : > { %v313_v48 = vadd.f32 %v312_v43, %v311_v44  ;;  %v1490_v49 = vmul.f32 %v1111_v5, %v1370_v20  ;;  %v314_v52 = vsel %vm210_vm0, %v307_v2, 0.0  ;;  %v1494_v53 = vmul.f32 %v1111_v5, %v1376_v25 }
  0x3c   : > { %351 = vrot.lane.b32.xlu1 %v1484_v45, %s1234_s4  ;;  %v1499_v54 = vmul.f32 %v1113_v47, %v1382_v27  ;;  %347 = vrot.lane.b32.xlu0 %v1487_v46, %s1234_s4  ;;  %v1504_v18 = vmul.f32 %v1113_v47, %v1379_v26  ;;  %v1507_v19 = vmul.f32 %v1113_v47, %v1394_v36  ;;  %v316_v20 = vsel %vm210_vm0, %v309_v9, 0.0 }
  0x3d   : > { %v315_v55 = vadd.f32 %v314_v52, %v313_v48  ;;  %v1511_v25 = vmul.f32 %v1113_v47, %v1399_v39  ;;  %v487_v57 = vrot.slane %v1487_v46, 1  ;;  %v492_v27 = vrot.slane %v1484_v45, 1 }
  0x3e   : > { %v306_v58 = vmul.f32 %v1484_v45, %v1499_v54  ;;  %v304_v26 = vmul.f32 %v1487_v46, %v1504_v18  ;;  %v308_v36 = vmul.f32 %v1490_v49, %v1507_v19  ;;  %v497_v59 = vrot.slane %v1490_v49, 1  ;;  %v1115_v60 = vpop.eup %1114 }
  0x3f   : > { %v310_v39 = vmul.f32 %v1494_v53, %v1511_v25  ;;  %v317_v62 = vadd.f32 %v316_v20, %v315_v55  ;;  %v1525_v63 = vsel %vm485_vm3, %v486_v4, %v487_v57  ;;  %v1528_v6 = vsel %vm485_vm3, %v491_v13, %v492_v27 }
  0x40   : > { %v319_v7 = vsel %vm210_vm0, %v306_v58, 0.0  ;;  %v318_v8 = vsel %vm210_vm0, %v304_v26, 0.0  ;;  %355 = vrot.lane.b32.xlu1 %v1490_v49, %s1234_s4  ;;  %v321_v10 = vsel %vm210_vm0, %v308_v36, 0.0  ;;  %353 = vrot.lane.b32.xlu0 %v1457_v38, %s1234_s4  ;;  %v293_v11 = vmul.f32 %v1115_v60, %v1412_v50 }
  0x41   : > { %v320_v12 = vadd.f32 %v319_v7, %v318_v8  ;;  %v323_v14 = vsel %vm210_vm0, %v310_v39, 0.0  ;;  %v325_v15 = vmul.f32 1.442695, %v317_v62  ;;  %v514_v16 = vmul.f32 %v1525_v63, %v1445_v33 }
  0x42   : > { %v489_v17 = vrot.slane %v293_v11, 1  ;;  %v296_v21 = vmul.f32 %v1115_v60, %v1415_v51  ;;  %v516_v22 = vmul.f32 %v1528_v6, %v1442_v32  ;;  %v1545_v23 = vmul.f32 %v1115_v60, %v1422_v56 }
  0x43   : > { %v322_v24 = vadd.f32 %v321_v10, %v320_v12  ;;  %1116 = vpow2.f32 %v325_v15  ;;  %v522_v50 = vsel %vm210_vm0, %v514_v16, 0.0  ;;  %v1549_v28 = vsel %vm485_vm3, %v496_v41, %v497_v59 }
  0x44   : > { %415 = vrot.lane.b32.xlu1 %v1487_v46, %s1235_s5  ;;  %413 = vrot.lane.b32.xlu0 %v1454_v37, %s1235_s5  ;;  %v1556_v51 = vsel %vm485_vm3, %v487_v57, %v489_v17  ;;  %v494_v29 = vrot.slane %v296_v21, 1  ;;  %v523_v56 = vsel %vm210_vm0, %v516_v22, 0.0  ;;  %v499_v30 = vrot.slane %v1545_v23, 1 }
  0x45   : > { %v324_v31 = vadd.f32 %v323_v14, %v322_v24  ;;  %v515_v0 = vmul.f32 %v1556_v51, %v1504_v18  ;;  %v524_v3 = vadd.f32 %v523_v56, %v522_v50  ;;  %v518_v2 = vmul.f32 %v1549_v28, %v1460_v40 }
  0x46   : > { %v1565_v4 = vsel %vm485_vm3, %v492_v27, %v494_v29  ;;  %v1568_v5 = vsel %vm485_vm3, %v497_v59, %v499_v30  ;;  %v1571_v9 = vmul.f32 %v1115_v60, %v1426_v61  ;;  %v502_v13 = vrot.slane %v1494_v53, 1 }
  0x47   : > { %v327_v41 = vmul.f32 1.442695, %v324_v31  ;;  %v529_v43 = vsel %vm210_vm0, %v515_v0, 0.0  ;;  %v517_v44 = vmul.f32 %v1565_v4, %v1499_v54  ;;  %v519_v47 = vmul.f32 %v1568_v5, %v1507_v19 }
  0x48   : > { %419 = vrot.lane.b32.xlu1 %v1484_v45, %s1235_s5  ;;  %417 = vrot.lane.b32.xlu0 %v1451_v35, %s1235_s5  ;;  %v525_v61 = vsel %vm210_vm0, %v518_v2, 0.0  ;;  %v504_v48 = vrot.slane %v1571_v9, 1  ;;  %v1588_v52 = vsel %vm485_vm3, %v501_v42, %v502_v13  ;;  %v696_v20 = vrot.slane %v1487_v46, 2 }
  0x49   : > { %1118 = vpow2.f32 %v327_v41  ;;  %v530_v55 = vsel %vm210_vm0, %v517_v44, 0.0  ;;  %v532_v57 = vsel %vm210_vm0, %v519_v47, 0.0  ;;  %v526_v27 = vadd.f32 %v525_v61, %v524_v3 }
  0x4a   : > { %v531_v58 = vadd.f32 %v530_v55, %v529_v43  ;;  %v1594_v26 = vsel %vm485_vm3, %v502_v13, %v504_v48  ;;  %v520_v36 = vmul.f32 %v1588_v52, %v1448_v34  ;;  %v698_v59 = vrot.slane %v293_v11, 2 }
  0x4b   : > { %v521_v42 = vmul.f32 %v1594_v26, %v1511_v25  ;;  %v695_v60 = vrot.slane %v1454_v37, 2  ;;  %v701_v39 = vrot.slane %v1484_v45, 2  ;;  %v703_v62 = vrot.slane %v296_v21, 2 }
  0x4c   : > { %359 = vrot.lane.b32.xlu1 %v1494_v53, %s1234_s4  ;;  %357 = vrot.lane.b32.xlu0 %v1463_v1, %s1234_s4  ;;  %v533_v7 = vadd.f32 %v532_v57, %v531_v58  ;;  %v527_v8 = vsel %vm210_vm0, %v520_v36, 0.0  ;;  %v1608_v10 = vsel %vm694_vm4, %v696_v20, %v698_v59  ;;  %v700_v11 = vrot.slane %v1451_v35, 2 }
  0x4d   : > { %v534_v12 = vsel %vm210_vm0, %v521_v42, 0.0  ;;  %v528_v14 = vadd.f32 %v527_v8, %v526_v27  ;;  %v724_v15 = vmul.f32 %v1608_v10, %v1504_v18  ;;  %v1615_v16 = vsel %vm694_vm4, %v695_v60, %v696_v20 }
  0x4e   : > { %v535_v17 = vadd.f32 %v534_v12, %v533_v7  ;;  %v723_v21 = vmul.f32 %v1615_v16, %v1445_v33  ;;  %v1620_v22 = vsel %vm694_vm4, %v701_v39, %v703_v62  ;;  %v1623_v24 = vsel %vm694_vm4, %v700_v11, %v701_v39 }
  0x4f   : > { %v536_v50 = vmul.f32 1.442695, %v528_v14  ;;  %v738_v29 = vsel %vm210_vm0, %v724_v15, 0.0  ;;  %v726_v56 = vmul.f32 %v1620_v22, %v1499_v54  ;;  %v725_v30 = vmul.f32 %v1623_v24, %v1442_v32 }
  0x50   : > { %v1630_v31 = vpop.eup %1116  ;;  %423 = vrot.lane.b32.xlu1 %v1490_v49, %s1235_s5  ;;  %421 = vrot.lane.b32.xlu0 %v1457_v38, %s1235_s5  ;;  %v538_v0 = vmul.f32 1.442695, %v535_v17  ;;  %v731_v3 = vsel %vm210_vm0, %v723_v21, 0.0  ;;  %v706_v2 = vrot.slane %v1490_v49, 2  ;;  %v708_v13 = vrot.slane %v1545_v23, 2 }
  0x51   : > { %1120 = vpow2.f32 %v536_v50  ;;  %v739_v41 = vsel %vm210_vm0, %v726_v56, 0.0  ;;  %v732_v43 = vsel %vm210_vm0, %v725_v30, 0.0  ;;  %v705_v44 = vrot.slane %v1457_v38, 2 }
  0x52   : > { %1122 = vpow2.f32 %v538_v0  ;;  %v740_v47 = vadd.f32 %v739_v41, %v738_v29  ;;  %v733_v61 = vadd.f32 %v732_v43, %v731_v3  ;;  %v1643_v48 = vsel %vm694_vm4, %v706_v2, %v708_v13 }
  0x53   : > { %v728_v20 = vmul.f32 %v1643_v48, %v1507_v19  ;;  %v1648_v55 = vsel %vm694_vm4, %v705_v44, %v706_v2  ;;  %v711_v23 = vrot.slane %v1494_v53, 2  ;;  %v713_v57 = vrot.slane %v1571_v9, 2 }
  0x54   : > { %427 = vrot.lane.b32.xlu1 %v1494_v53, %s1235_s5  ;;  %425 = vrot.lane.b32.xlu0 %v1463_v1, %s1235_s5  ;;  %v727_v27 = vmul.f32 %v1648_v55, %v1460_v40  ;;  %v710_v58 = vrot.slane %v1463_v1, 2  ;;  %v1661_v36 = vmul.f32 %v1630_v31, %v1463_v1  ;;  %v1669_v9 = vmul.f32 %v1630_v31, %v1454_v37 }
  0x55   : > { %v741_v59 = vsel %vm210_vm0, %v728_v20, 0.0  ;;  %v1665_v42 = vsel %vm694_vm4, %v711_v23, %v713_v57  ;;  %v1673_v60 = vmul.f32 %v1630_v31, %v1451_v35 }
  0x56   : > { %v1675_v39 = vpop.eup %1118  ;;  %v742_v62 = vadd.f32 %v741_v59, %v740_v47  ;;  %v734_v7 = vsel %vm210_vm0, %v727_v27, 0.0  ;;  %v730_v1 = vmul.f32 %v1665_v42, %v1511_v25  ;;  %v1681_v8 = vsel %vm694_vm4, %v710_v58, %v711_v23 }
  0x57   : > { %v735_v11 = vadd.f32 %v734_v7, %v733_v61  ;;  %v729_v37 = vmul.f32 %v1681_v8, %v1448_v34  ;;  %v1687_v12 = vmul.f32 %v1675_v39, %v1494_v53  ;;  %v1691_v35 = vmul.f32 %v1675_v39, %v1487_v46 }
  0x58   : > { %560 = vrot.lane.b32.xlu1 %v1556_v51, %s1234_s4  ;;  %558 = vrot.lane.b32.xlu0 %v1525_v63, %s1234_s4  ;;  %v743_v14 = vsel %vm210_vm0, %v730_v1, 0.0  ;;  %v1700_v15 = vmul.f32 %v1675_v39, %v1484_v45  ;;  %v1704_v53 = vmul.f32 %v1630_v31, %v1457_v38  ;;  %v1708_v46 = vmul.f32 %v1675_v39, %v1490_v49 }
  0x59   : > { %v744_v17 = vadd.f32 %v743_v14, %v742_v62  ;;  %v736_v21 = vsel %vm210_vm0, %v729_v37, 0.0 }
  0x5a   : > { %v737_v50 = vadd.f32 %v736_v21, %v735_v11 }
  0x5b   : > { %v747_v29 = vmul.f32 1.442695, %v744_v17 }
  0x5c   : > { %564 = vrot.lane.b32.xlu1 %v1565_v4, %s1234_s4  ;;  %562 = vrot.lane.b32.xlu0 %v1528_v6, %s1234_s4  ;;  %v745_v45 = vmul.f32 1.442695, %v737_v50 }
  0x5d   : > { %1124 = vpow2.f32 %v747_v29 }
  0x5e   : > { %v1715_v56 = vpop.eup %1120  ;;  %1126 = vpow2.f32 %v745_v45 }
  0x5f   : > { %v1717_v38 = vpop.eup %1122  ;;  %v1721_v49 = vmul.f32 %v1715_v56, %v1588_v52  ;;  %v1737_v0 = vmul.f32 %v1715_v56, %v1525_v63  ;;  %v1745_v2 = vmul.f32 %v1715_v56, %v1528_v6  ;;  %v1753_v41 = vmul.f32 %v1715_v56, %v1549_v28 }
  0x60   : > { %568 = vrot.lane.b32.xlu1 %v1568_v5, %s1234_s4  ;;  %566 = vrot.lane.b32.xlu0 %v1549_v28, %s1234_s4  ;;  %v1729_v30 = vmul.f32 %v1717_v38, %v1594_v26  ;;  %v1741_v3 = vmul.f32 %v1717_v38, %v1556_v51  ;;  %v1749_v13 = vmul.f32 %v1717_v38, %v1565_v4 }
  0x64   : > { %628 = vrot.lane.b32.xlu1 %v1556_v51, %s1235_s5  ;;  %626 = vrot.lane.b32.xlu0 %v1525_v63, %s1235_s5  ;;  %v1757_v63 = vmul.f32 %v1717_v38, %v1568_v5 }
  0x68   : > { %632 = vrot.lane.b32.xlu1 %v1565_v4, %s1235_s5  ;;  %630 = vrot.lane.b32.xlu0 %v1528_v6, %s1235_s5 }
  0x6a   : > { %v1763_v51 = vpop.eup %1124 }
  0x6b   : > { %2224 = vst [vmem:[#allocation5_spill] sm:$0xff] %v1763_v51  ;;  %v1765_v43 = vpop.eup %1126  ;;  %v1769_v44 = vmul.f32 %v1763_v51, %v1665_v42 }
  0x6c   : > { %2225 = vst [vmem:[#allocation6_spill] sm:$0xff] %v1765_v43  ;;  %572 = vrot.lane.b32.xlu1 %v1594_v26, %s1234_s4  ;;  %570 = vrot.lane.b32.xlu0 %v1588_v52, %s1234_s4  ;;  %v1777_v4 = vmul.f32 %v1765_v43, %v1681_v8  ;;  %v1805_v6 = vmul.f32 %v1765_v43, %v1615_v16 }
  0x6d   : > { %2226 = vst [vmem:[#allocation7_spill] sm:$0xff] %v1769_v44 }
  0x6e   : > { %2227 = vst [vmem:[#allocation8_spill] sm:$0xff] %v1777_v4  ;;  %2228 = vst [vmem:[#allocation9_spill] sm:$0xff] %v1805_v6 }
  0x70   : > { %636 = vrot.lane.b32.xlu1 %v1568_v5, %s1235_s5  ;;  %634 = vrot.lane.b32.xlu0 %v1549_v28, %s1235_s5  ;;  %v1809_v28 = vmul.f32 %v1763_v51, %v1608_v10  ;;  %v1813_v5 = vmul.f32 %v1765_v43, %v1623_v24 }
  0x72   : > { %2229 = vst [vmem:[#allocation10_spill] sm:$0xff] %v1809_v28  ;;  %2230 = vst [vmem:[#allocation11_spill] sm:$0xff] %v1813_v5 }
  0x74   : > { %640 = vrot.lane.b32.xlu1 %v1594_v26, %s1235_s5  ;;  %638 = vrot.lane.b32.xlu0 %v1588_v52, %s1235_s5  ;;  %v1817_v52 = vmul.f32 %v1763_v51, %v1620_v22  ;;  %v1821_v26 = vmul.f32 %v1765_v43, %v1648_v55 }
  0x76   : > { %2231 = vst [vmem:[#allocation12_spill] sm:$0xff] %v1817_v52  ;;  %2232 = vst [vmem:[#allocation13_spill] sm:$0xff] %v1821_v26 }
  0x78   : > { %769 = vrot.lane.b32.xlu1 %v1608_v10, %s1234_s4  ;;  %767 = vrot.lane.b32.xlu0 %v1615_v16, %s1234_s4 }
  0x7c   : > { %773 = vrot.lane.b32.xlu1 %v1620_v22, %s1234_s4  ;;  %771 = vrot.lane.b32.xlu0 %v1623_v24, %s1234_s4 }
  0x80   : > { %777 = vrot.lane.b32.xlu1 %v1643_v48, %s1234_s4  ;;  %775 = vrot.lane.b32.xlu0 %v1648_v55, %s1234_s4 }
  0x84   : > { %837 = vrot.lane.b32.xlu1 %v1608_v10, %s1235_s5  ;;  %835 = vrot.lane.b32.xlu0 %v1615_v16, %s1235_s5  ;;  %v1825_v16 = vmul.f32 %v1763_v51, %v1643_v48 }
  0x86   : > { %2233 = vst [vmem:[#allocation14_spill] sm:$0xff] %v1825_v16 }
  0x88   : > { %841 = vrot.lane.b32.xlu1 %v1620_v22, %s1235_s5  ;;  %839 = vrot.lane.b32.xlu0 %v1623_v24, %s1235_s5 }
  0x8c   : > { %781 = vrot.lane.b32.xlu1 %v1665_v42, %s1234_s4  ;;  %779 = vrot.lane.b32.xlu0 %v1681_v8, %s1234_s4 }
  0x90   : > { %845 = vrot.lane.b32.xlu1 %v1643_v48, %s1235_s5  ;;  %843 = vrot.lane.b32.xlu0 %v1648_v55, %s1235_s5 }
  0x94   : > { %849 = vrot.lane.b32.xlu1 %v1665_v42, %s1235_s5  ;;  %847 = vrot.lane.b32.xlu0 %v1681_v8, %s1235_s5 }
  0xaa   : > { %v1843_v10 = vpop.permute.xlu1 %349  ;;  %v1845_v22 = vpop.permute.xlu0 %345 }
  0xab   : > { %v371_v24 = vmul.f32 %v1843_v10, %v1442_v32  ;;  %v369_v47 = vmul.f32 %v1845_v22, %v1445_v33 }
  0xad   : > { %v378_v61 = vsel %vm210_vm0, %v371_v24, 0.0  ;;  %v377_v48 = vsel %vm210_vm0, %v369_v47, 0.0 }
  0xae   : > { %v379_v20 = vadd.f32 %v378_v61, %v377_v48  ;;  %v1853_v55 = vpop.permute.xlu1 %351  ;;  %v1855_v23 = vpop.permute.xlu0 %347 }
  0xaf   : > { %v372_v57 = vmul.f32 %v1853_v55, %v1499_v54  ;;  %v370_v27 = vmul.f32 %v1855_v23, %v1504_v18 }
  0xb1   : > { %v385_v58 = vsel %vm210_vm0, %v372_v57, 0.0  ;;  %v384_v59 = vsel %vm210_vm0, %v370_v27, 0.0 }
  0xb2   : > { %v386_v42 = vadd.f32 %v385_v58, %v384_v59  ;;  %v1863_v62 = vpop.permute.xlu1 %355  ;;  %v1865_v7 = vpop.permute.xlu0 %353 }
  0xb3   : > { %v374_v1 = vmul.f32 %v1863_v62, %v1507_v19  ;;  %v373_v8 = vmul.f32 %v1865_v7, %v1460_v40 }
  0xb5   : > { %v387_v11 = vsel %vm210_vm0, %v374_v1, 0.0  ;;  %v380_v37 = vsel %vm210_vm0, %v373_v8, 0.0 }
  0xb6   : > { %v388_v14 = vadd.f32 %v387_v11, %v386_v42  ;;  %v381_v17 = vadd.f32 %v380_v37, %v379_v20  ;;  %v1873_v21 = vpop.permute.xlu1 %415  ;;  %v1875_v50 = vpop.permute.xlu0 %413 }
  0xb7   : > { %v438_v29 = vmul.f32 %v1873_v21, %v1504_v18  ;;  %v437_v45 = vmul.f32 %v1875_v50, %v1445_v33 }
  0xb9   : > { %v452_v20 = vsel %vm210_vm0, %v438_v29, 0.0  ;;  %v445_v57 = vsel %vm210_vm0, %v437_v45, 0.0 }
  0xba   : > { %v1881_v24 = vpop.permute.xlu1 %419  ;;  %v1883_v47 = vpop.permute.xlu0 %417 }
  0xbb   : > { %v440_v61 = vmul.f32 %v1881_v24, %v1499_v54  ;;  %v439_v48 = vmul.f32 %v1883_v47, %v1442_v32 }
  0xbd   : > { %v453_v27 = vsel %vm210_vm0, %v440_v61, 0.0  ;;  %v446_v58 = vsel %vm210_vm0, %v439_v48, 0.0 }
  0xbe   : > { %v454_v59 = vadd.f32 %v453_v27, %v452_v20  ;;  %v447_v42 = vadd.f32 %v446_v58, %v445_v57  ;;  %v360_v1 = vpop.permute.xlu1 %359  ;;  %v358_v8 = vpop.permute.xlu0 %357 }
  0xbf   : > { %v376_v11 = vmul.f32 %v360_v1, %v1511_v25  ;;  %v375_v37 = vmul.f32 %v358_v8, %v1448_v34 }
  0xc1   : > { %v389_v16 = vsel %vm210_vm0, %v376_v11, 0.0  ;;  %v382_v26 = vsel %vm210_vm0, %v375_v37, 0.0 }
  0xc2   : > { %v390_v52 = vadd.f32 %v389_v16, %v388_v14  ;;  %v383_v29 = vadd.f32 %v382_v26, %v381_v17  ;;  %v1897_v5 = vpop.permute.xlu1 %423  ;;  %v1899_v45 = vpop.permute.xlu0 %421 }
  0xc3   : > { %v442_v61 = vmul.f32 %v1897_v5, %v1507_v19  ;;  %v441_v48 = vmul.f32 %v1899_v45, %v1460_v40 }
  0xc4   : > { %v393_v20 = vmul.f32 1.442695, %v390_v52  ;;  %v391_v57 = vmul.f32 1.442695, %v383_v29 }
  0xc5   : > { %v455_v27 = vsel %vm210_vm0, %v442_v61, 0.0  ;;  %v448_v58 = vsel %vm210_vm0, %v441_v48, 0.0 }
  0xc6   : > { %1128 = vpow2.f32 %v393_v20  ;;  %v456_v11 = vadd.f32 %v455_v27, %v454_v59  ;;  %v449_v16 = vadd.f32 %v448_v58, %v447_v42  ;;  %v1907_v26 = vpop.permute.xlu1 %427  ;;  %v1909_v14 = vpop.permute.xlu0 %425 }
  0xc7   : > { %1130 = vpow2.f32 %v391_v57  ;;  %v444_v17 = vmul.f32 %v1907_v26, %v1511_v25  ;;  %v443_v37 = vmul.f32 %v1909_v14, %v1448_v34 }
  0xc9   : > { %v457_v52 = vsel %vm210_vm0, %v444_v17, 0.0  ;;  %v450_v29 = vsel %vm210_vm0, %v443_v37, 0.0 }
  0xca   : > { %v458_v61 = vadd.f32 %v457_v52, %v456_v11  ;;  %v451_v48 = vadd.f32 %v450_v29, %v449_v16  ;;  %v1917_v20 = vpop.permute.xlu1 %560  ;;  %v1919_v59 = vpop.permute.xlu0 %558 }
  0xcb   : > { %2234 = vst [vmem:[#allocation15_spill] sm:$0xff] %v1917_v20  ;;  %2235 = vst [vmem:[#allocation16_spill] sm:$0xff] %v1919_v59  ;;  %v583_v11 = vmul.f32 %v1917_v20, %v1504_v18  ;;  %v582_v16 = vmul.f32 %v1919_v59, %v1445_v33 }
  0xcc   : > { %v461_v42 = vmul.f32 1.442695, %v458_v61  ;;  %v459_v27 = vmul.f32 1.442695, %v451_v48 }
  0xcd   : > { %v597_v59 = vsel %vm210_vm0, %v583_v11, 0.0 }
  0xce   : > { %1132 = vpow2.f32 %v461_v42  ;;  %v1921_v57 = vpop.permute.xlu1 %564  ;;  %v1923_v58 = vpop.permute.xlu0 %562 }
  0xcf   : > { %2236 = vst [vmem:[#allocation17_spill] sm:$0xff] %v1921_v57  ;;  %2237 = vst [vmem:[#allocation18_spill] sm:$0xff] %v1923_v58  ;;  %1134 = vpow2.f32 %v459_v27  ;;  %v585_v28 = vmul.f32 %v1921_v57, %v1499_v54  ;;  %v584_v17 = vmul.f32 %v1923_v58, %v1442_v32 }
  0xd1   : > { %v598_v61 = vsel %vm210_vm0, %v585_v28, 0.0  ;;  %v591_v48 = vsel %vm210_vm0, %v584_v17, 0.0  ;;  %v590_v28 = vsel %vm210_vm0, %v582_v16, 0.0 }
  0xd2   : > { %v1933_v37 = vpop.permute.xlu1 %568  ;;  %v1935_v52 = vpop.permute.xlu0 %566  ;;  %v599_v57 = vadd.f32 %v598_v61, %v597_v59  ;;  %v592_v20 = vadd.f32 %v591_v48, %v590_v28 }
  0xd3   : > { %2238 = vst [vmem:[#allocation19_spill] sm:$0xff] %v1933_v37  ;;  %2239 = vst [vmem:[#allocation20_spill] sm:$0xff] %v1935_v52  ;;  %v1129_v29 = vpop.eup %1128  ;;  %v587_v42 = vmul.f32 %v1933_v37, %v1507_v19  ;;  %v586_v27 = vmul.f32 %v1935_v52, %v1460_v40 }
  0xd4   : > { %v1131_v6 = vpop.eup %1130  ;;  %v402_v4 = vmul.f32 %v1129_v29, %v360_v1  ;;  %v412_v44 = vadd.f32 %v1129_v29, %v1675_v39  ;;  %v396_v43 = vmul.f32 %v1129_v29, %v1855_v23  ;;  %v398_v51 = vmul.f32 %v1129_v29, %v1853_v55 }
  0xd5   : > { %v401_v58 = vmul.f32 %v1131_v6, %v358_v8  ;;  %v411_v17 = vadd.f32 %v1131_v6, %v1630_v31  ;;  %v395_v39 = vmul.f32 %v1131_v6, %v1845_v22  ;;  %v600_v55 = vsel %vm210_vm0, %v587_v42, 0.0 }
  0xd6   : > { %v410_v37 = vadd.f32 %v402_v4, %v1687_v12  ;;  %v1950_v52 = vpop.permute.xlu1 %628  ;;  %v1952_v1 = vpop.permute.xlu0 %626  ;;  %v593_v8 = vsel %vm210_vm0, %v586_v27, 0.0  ;;  %v397_v11 = vmul.f32 %v1131_v6, %v1843_v10  ;;  %v399_v31 = vmul.f32 %v1131_v6, %v1865_v7 }
  0xd7   : > { %v409_v23 = vadd.f32 %v401_v58, %v1661_v36  ;;  %v400_v12 = vmul.f32 %v1129_v29, %v1863_v62  ;;  %v403_v4 = vadd.f32 %v395_v39, %v1669_v9  ;;  %v404_v59 = vadd.f32 %v396_v43, %v1691_v35 }
  0xd8   : > { %v651_v16 = vmul.f32 %v1950_v52, %v1504_v18  ;;  %v650_v36 = vmul.f32 %v1952_v1, %v1445_v33  ;;  %v405_v22 = vadd.f32 %v397_v11, %v1673_v60  ;;  %v406_v58 = vadd.f32 %v398_v51, %v1700_v15 }
  0xd9   : > { %v407_v6 = vadd.f32 %v399_v31, %v1704_v53  ;;  %v408_v9 = vadd.f32 %v400_v12, %v1708_v46  ;;  %v601_v35 = vadd.f32 %v600_v55, %v599_v57  ;;  %v594_v43 = vadd.f32 %v593_v8, %v592_v20 }
  0xda   : > { %v1969_v61 = vpop.permute.xlu1 %632  ;;  %v1971_v10 = vpop.permute.xlu0 %630  ;;  %v665_v46 = vsel %vm210_vm0, %v651_v16, 0.0  ;;  %v658_v20 = vsel %vm210_vm0, %v650_v36, 0.0 }
  0xdb   : > { %v1133_v62 = vpop.eup %1132  ;;  %v653_v7 = vmul.f32 %v1969_v61, %v1499_v54  ;;  %v652_v29 = vmul.f32 %v1971_v10, %v1442_v32 }
  0xdc   : > { %v1135_v60 = vpop.eup %1134  ;;  %v470_v15 = vmul.f32 %v1133_v62, %v1907_v26  ;;  %v480_v51 = vadd.f32 %v1133_v62, %v412_v44  ;;  %v464_v48 = vmul.f32 %v1133_v62, %v1873_v21  ;;  %v466_v42 = vmul.f32 %v1133_v62, %v1881_v24 }
  0xdd   : > { %v469_v53 = vmul.f32 %v1135_v60, %v1909_v14  ;;  %v479_v57 = vadd.f32 %v1135_v60, %v411_v17  ;;  %v666_v28 = vsel %vm210_vm0, %v653_v7, 0.0  ;;  %v659_v39 = vsel %vm210_vm0, %v652_v29, 0.0 }
  0xde   : > { %v478_v27 = vadd.f32 %v470_v15, %v410_v37  ;;  %v1987_v55 = vpop.permute.xlu1 %572  ;;  %v1989_v26 = vpop.permute.xlu0 %570  ;;  %v1992_v44 = vadd.f32 %v1717_v38, %v480_v51  ;;  %v463_v8 = vmul.f32 %v1135_v60, %v1875_v50  ;;  %v465_v11 = vmul.f32 %v1135_v60, %v1883_v47 }
  0xdf   : > { %v477_v21 = vadd.f32 %v469_v53, %v409_v23  ;;  %v589_v24 = vmul.f32 %v1987_v55, %v1511_v25  ;;  %v588_v14 = vmul.f32 %v1989_v26, %v1448_v34  ;;  %v1999_v37 = vadd.f32 %v1715_v56, %v479_v57 }
  0xe0   : > { %v2002_v17 = vadd.f32 %v1729_v30, %v478_v27  ;;  %v467_v38 = vmul.f32 %v1135_v60, %v1899_v45  ;;  %v468_v16 = vmul.f32 %v1133_v62, %v1897_v5  ;;  %v471_v50 = vadd.f32 %v463_v8, %v403_v4 }
  0xe1   : > { %v602_v23 = vsel %vm210_vm0, %v589_v24, 0.0  ;;  %v2009_v31 = vadd.f32 %v1721_v49, %v477_v21  ;;  %v595_v12 = vsel %vm210_vm0, %v588_v14, 0.0  ;;  %v472_v29 = vadd.f32 %v464_v48, %v404_v59 }
  0xe2   : > { %v603_v56 = vadd.f32 %v602_v23, %v601_v35  ;;  %v596_v36 = vadd.f32 %v595_v12, %v594_v43  ;;  %v2013_v7 = vpop.permute.xlu1 %636  ;;  %v2015_v30 = vpop.permute.xlu0 %634  ;;  %v473_v49 = vadd.f32 %v465_v11, %v405_v22  ;;  %v474_v60 = vadd.f32 %v466_v42, %v406_v58 }
  0xe3   : > { %v655_v47 = vmul.f32 %v2013_v7, %v1507_v19  ;;  %v654_v45 = vmul.f32 %v2015_v30, %v1460_v40  ;;  %v475_v53 = vadd.f32 %v467_v38, %v407_v6  ;;  %v476_v5 = vadd.f32 %v468_v16, %v408_v9 }
  0xe4   : > { %v606_v15 = vmul.f32 1.442695, %v603_v56  ;;  %v604_v51 = vmul.f32 1.442695, %v596_v36  ;;  %v548_v43 = vadd.f32 %v1737_v0, %v471_v50  ;;  %v549_v4 = vadd.f32 %v1741_v3, %v472_v29 }
  0xe5   : > { %v668_v62 = vsel %vm210_vm0, %v655_v47, 0.0  ;;  %v661_v35 = vsel %vm210_vm0, %v654_v45, 0.0  ;;  %v667_v59 = vadd.f32 %v666_v28, %v665_v46  ;;  %v660_v48 = vadd.f32 %v659_v39, %v658_v20 }
  0xe6   : > { %1136 = vpow2.f32 %v606_v15  ;;  %v2025_v57 = vpop.permute.xlu1 %640  ;;  %v2027_v27 = vpop.permute.xlu0 %638  ;;  %v550_v22 = vadd.f32 %v1745_v2, %v473_v49  ;;  %v551_v0 = vadd.f32 %v1749_v13, %v474_v60  ;;  %v552_v42 = vadd.f32 %v1753_v41, %v475_v53  ;;  %v2240_v15 = vld [vmem:[#allocation15_spill] sm:$0xff]  ;;  %v2241_v53 = vld [vmem:[#allocation17_spill] sm:$0xff] }
  0xe7   : > { %1138 = vpow2.f32 %v604_v51  ;;  %v657_v58 = vmul.f32 %v2025_v57, %v1511_v25  ;;  %v656_v6 = vmul.f32 %v2027_v27, %v1448_v34  ;;  %v669_v9 = vadd.f32 %v668_v62, %v667_v59 }
  0xe8   : > { %v662_v3 = vadd.f32 %v661_v35, %v660_v48  ;;  %v553_v46 = vadd.f32 %v1757_v63, %v476_v5 }
  0xe9   : > { %v670_v20 = vsel %vm210_vm0, %v657_v58, 0.0  ;;  %v663_v28 = vsel %vm210_vm0, %v656_v6, 0.0 }
  0xea   : > { %v671_v2 = vadd.f32 %v670_v20, %v669_v9  ;;  %v664_v39 = vadd.f32 %v663_v28, %v662_v3  ;;  %v2039_v21 = vpop.permute.xlu1 %769  ;;  %v2041_v24 = vpop.permute.xlu0 %767 }
  0xeb   : > { %v792_v38 = vmul.f32 %v2039_v21, %v1504_v18  ;;  %v791_v23 = vmul.f32 %v2041_v24, %v1445_v33 }
  0xec   : > { %v674_v14 = vmul.f32 1.442695, %v671_v2  ;;  %v672_v8 = vmul.f32 1.442695, %v664_v39  ;;  %v2243_v39 = vld [vmem:[#allocation18_spill] sm:$0xff] }
  0xed   : > { %v806_v35 = vsel %vm210_vm0, %v792_v38, 0.0  ;;  %v799_v59 = vsel %vm210_vm0, %v791_v23, 0.0 }
  0xee   : > { %1140 = vpow2.f32 %v674_v14  ;;  %v2043_v13 = vpop.permute.xlu1 %773  ;;  %v2045_v11 = vpop.permute.xlu0 %771 }
  0xef   : > { %1142 = vpow2.f32 %v672_v8  ;;  %v794_v41 = vmul.f32 %v2043_v13, %v1499_v54  ;;  %v793_v63 = vmul.f32 %v2045_v11, %v1442_v32  ;;  %v2244_v8 = vld [vmem:[#allocation20_spill] sm:$0xff] }
  0xf1   : > { %v807_v36 = vsel %vm210_vm0, %v794_v41, 0.0  ;;  %v800_v50 = vsel %vm210_vm0, %v793_v63, 0.0  ;;  %v2245_v41 = vld [vmem:[#allocation19_spill] sm:$0xff] }
  0xf2   : > { %v2055_v12 = vpop.permute.xlu1 %777  ;;  %v2057_v16 = vpop.permute.xlu0 %775  ;;  %v808_v6 = vadd.f32 %v807_v36, %v806_v35  ;;  %v801_v9 = vadd.f32 %v800_v50, %v799_v59 }
  0xf3   : > { %v1137_v56 = vpop.eup %1136  ;;  %v796_v29 = vmul.f32 %v2055_v12, %v1507_v19  ;;  %v795_v47 = vmul.f32 %v2057_v16, %v1460_v40 }
  0xf4   : > { %v1139_v45 = vpop.eup %1138  ;;  %v615_v49 = vmul.f32 %v1137_v56, %v1987_v55  ;;  %v625_v60 = vadd.f32 %v1137_v56, %v1992_v44  ;;  %v609_v51 = vmul.f32 %v1137_v56, %v2240_v15  ;;  %v611_v5 = vmul.f32 %v1137_v56, %v2241_v53  ;;  %v2242_v44 = vld [vmem:[#allocation16_spill] sm:$0xff] }
  0xf5   : > { %v614_v62 = vmul.f32 %v1139_v45, %v1989_v26  ;;  %v624_v48 = vadd.f32 %v1139_v45, %v1999_v37  ;;  %v608_v20 = vmul.f32 %v1139_v45, %v2242_v44  ;;  %v809_v26 = vsel %vm210_vm0, %v796_v29, 0.0 }
  0xf6   : > { %v623_v58 = vadd.f32 %v615_v49, %v2002_v17  ;;  %v2074_v3 = vpop.permute.xlu1 %837  ;;  %v2076_v55 = vpop.permute.xlu0 %835  ;;  %v802_v2 = vsel %vm210_vm0, %v795_v47, 0.0  ;;  %v610_v14 = vmul.f32 %v1139_v45, %v2243_v39  ;;  %v612_v37 = vmul.f32 %v1139_v45, %v2244_v8 }
  0xf7   : > { %v622_v28 = vadd.f32 %v614_v62, %v2009_v31  ;;  %v613_v17 = vmul.f32 %v1137_v56, %v2245_v41  ;;  %v616_v63 = vadd.f32 %v608_v20, %v548_v43  ;;  %v617_v38 = vadd.f32 %v609_v51, %v549_v4  ;;  %v2248_v20 = vld [vmem:[#allocation7_spill] sm:$0xff] }
  0xf8   : > { %v860_v23 = vmul.f32 %v2074_v3, %v1504_v18  ;;  %v859_v36 = vmul.f32 %v2076_v55, %v1445_v33  ;;  %v618_v50 = vadd.f32 %v610_v14, %v550_v22  ;;  %v619_v31 = vadd.f32 %v611_v5, %v551_v0  ;;  %v2249_v14 = vld [vmem:[#allocation8_spill] sm:$0xff] }
  0xf9   : > { %v620_v47 = vadd.f32 %v612_v37, %v552_v42  ;;  %v621_v15 = vadd.f32 %v613_v17, %v553_v46  ;;  %v810_v45 = vadd.f32 %v809_v26, %v808_v6  ;;  %v803_v62 = vadd.f32 %v802_v2, %v801_v9 }
  0xfa   : > { %v2089_v49 = vpop.permute.xlu1 %841  ;;  %v2091_v29 = vpop.permute.xlu0 %839  ;;  %v874_v46 = vsel %vm210_vm0, %v860_v23, 0.0  ;;  %v867_v51 = vsel %vm210_vm0, %v859_v36, 0.0 }
  0xfb   : > { %v1141_v53 = vpop.eup %1140  ;;  %v862_v43 = vmul.f32 %v2089_v49, %v1499_v54  ;;  %v861_v18 = vmul.f32 %v2091_v29, %v1442_v32 }
  0xfc   : > { %v1143_v4 = vpop.eup %1142  ;;  %v683_v33 = vmul.f32 %v1141_v53, %v2025_v57  ;;  %v693_v22 = vadd.f32 %v1141_v53, %v625_v60  ;;  %v677_v0 = vmul.f32 %v1141_v53, %v1950_v52  ;;  %v679_v56 = vmul.f32 %v1141_v53, %v1969_v61  ;;  %v2246_v57 = vld [vmem:[#allocation5_spill] sm:$0xff] }
  0xfd   : > { %v682_v42 = vmul.f32 %v1143_v4, %v2027_v27  ;;  %v692_v5 = vadd.f32 %v1143_v4, %v624_v48  ;;  %v875_v54 = vsel %vm210_vm0, %v862_v43, 0.0  ;;  %v868_v32 = vsel %vm210_vm0, %v861_v18, 0.0  ;;  %v2247_v27 = vld [vmem:[#allocation6_spill] sm:$0xff] }
  0xfe   : > { %v691_v35 = vadd.f32 %v683_v33, %v623_v58  ;;  %v782_v59 = vpop.permute.xlu1 %781  ;;  %v780_v6 = vpop.permute.xlu0 %779  ;;  %v766_v60 = vadd.f32 %v2246_v57, %v693_v22  ;;  %v676_v48 = vmul.f32 %v1143_v4, %v1952_v1  ;;  %v678_v58 = vmul.f32 %v1143_v4, %v1971_v10 }
  0xff   : > { %v690_v9 = vadd.f32 %v682_v42, %v622_v28  ;;  %v798_v52 = vmul.f32 %v782_v59, %v1511_v25  ;;  %v797_v61 = vmul.f32 %v780_v6, %v1448_v34  ;;  %v765_v44 = vadd.f32 %v2247_v27, %v692_v5 }
 0x100   : > { %v764_v26 = vadd.f32 %v2248_v20, %v691_v35  ;;  %v680_v2 = vmul.f32 %v1143_v4, %v2015_v30  ;;  %v681_v37 = vmul.f32 %v1141_v53, %v2013_v7  ;;  %v684_v43 = vadd.f32 %v676_v48, %v616_v63  ;;  %v2251_v63 = vld [vmem:[#allocation10_spill] sm:$0xff] }
 0x101   : > { %v811_v39 = vsel %vm210_vm0, %v798_v52, 0.0  ;;  %v763_v8 = vadd.f32 %v2249_v14, %v690_v9  ;;  %v804_v28 = vsel %vm210_vm0, %v797_v61, 0.0  ;;  %v685_v1 = vadd.f32 %v677_v0, %v617_v38  ;;  %v2254_v61 = vld [vmem:[#allocation13_spill] sm:$0xff]  ;;  %v2255_v20 = vld [vmem:[#allocation14_spill] sm:$0xff] }
 0x102   : > { %v812_v41 = vadd.f32 %v811_v39, %v810_v45  ;;  %v805_v17 = vadd.f32 %v804_v28, %v803_v62  ;;  %v2117_v23 = vpop.permute.xlu1 %845  ;;  %v2119_v36 = vpop.permute.xlu0 %843  ;;  %v686_v18 = vadd.f32 %v678_v58, %v618_v50  ;;  %v687_v4 = vadd.f32 %v679_v56, %v619_v31  ;;  %v2250_v62 = vld [vmem:[#allocation9_spill] sm:$0xff] }
 0x103   : > { %v864_v10 = vmul.f32 %v2117_v23, %v1507_v19  ;;  %v863_v30 = vmul.f32 %v2119_v36, %v1460_v40  ;;  %v688_v42 = vadd.f32 %v680_v2, %v620_v47  ;;  %v689_v7 = vadd.f32 %v681_v37, %v621_v15  ;;  %v2252_v40 = vld [vmem:[#allocation11_spill] sm:$0xff]  ;;  %v2253_v15 = vld [vmem:[#allocation12_spill] sm:$0xff] }
 0x104   : > { %v815_v33 = vmul.f32 1.442695, %v812_v41  ;;  %v813_v22 = vmul.f32 1.442695, %v805_v17  ;;  %v757_v5 = vadd.f32 %v2250_v62, %v684_v43  ;;  %v758_v38 = vadd.f32 %v2251_v63, %v685_v1 }
 0x105   : > { %v877_v53 = vsel %vm210_vm0, %v864_v10, 0.0  ;;  %v870_v45 = vsel %vm210_vm0, %v863_v30, 0.0  ;;  %v876_v0 = vadd.f32 %v875_v54, %v874_v46  ;;  %v869_v35 = vadd.f32 %v868_v32, %v867_v51 }
 0x106   : > { %1144 = vpow2.f32 %v815_v33  ;;  %v850_v19 = vpop.permute.xlu1 %849  ;;  %v848_v57 = vpop.permute.xlu0 %847  ;;  %v759_v50 = vadd.f32 %v2252_v40, %v686_v18  ;;  %v760_v56 = vadd.f32 %v2253_v15, %v687_v4  ;;  %v761_v27 = vadd.f32 %v2254_v61, %v688_v42 }
 0x107   : > { %1146 = vpow2.f32 %v813_v22  ;;  %v866_v31 = vmul.f32 %v850_v19, %v1511_v25  ;;  %v865_v47 = vmul.f32 %v848_v57, %v1448_v34  ;;  %v878_v9 = vadd.f32 %v877_v53, %v876_v0 }
 0x108   : > { %v871_v52 = vadd.f32 %v870_v45, %v869_v35  ;;  %v762_v48 = vadd.f32 %v2255_v20, %v689_v7 }
 0x109   : > { %v879_v46 = vsel %vm210_vm0, %v866_v31, 0.0  ;;  %v872_v51 = vsel %vm210_vm0, %v865_v47, 0.0 }
 0x10a   : > { %v880_v54 = vadd.f32 %v879_v46, %v878_v9  ;;  %v873_v32 = vadd.f32 %v872_v51, %v871_v52 }
 0x10c   : > { %v883_v58 = vmul.f32 1.442695, %v880_v54  ;;  %v881_v2 = vmul.f32 1.442695, %v873_v32 }
 0x10e   : > { %1148 = vpow2.f32 %v883_v58 }
 0x10f   : > { %1150 = vpow2.f32 %v881_v2 }
 0x113   : > { %v1145_v25 = vpop.eup %1144 }
 0x114   : > { %v1147_v34 = vpop.eup %1146  ;;  %v824_v39 = vmul.f32 %v1145_v25, %v782_v59  ;;  %v834_v14 = vadd.f32 %v1145_v25, %v766_v60  ;;  %v818_v28 = vmul.f32 %v1145_v25, %v2039_v21  ;;  %v820_v37 = vmul.f32 %v1145_v25, %v2043_v13 }
 0x115   : > { %v823_v41 = vmul.f32 %v1147_v34, %v780_v6  ;;  %v833_v17 = vadd.f32 %v1147_v34, %v765_v44  ;;  %v817_v43 = vmul.f32 %v1147_v34, %v2041_v24  ;;  %v819_v1 = vmul.f32 %v1147_v34, %v2045_v11 }
 0x116   : > { %v832_v10 = vadd.f32 %v824_v39, %v764_v26  ;;  %v821_v30 = vmul.f32 %v1147_v34, %v2057_v16  ;;  %v822_v18 = vmul.f32 %v1145_v25, %v2055_v12  ;;  %v826_v4 = vadd.f32 %v818_v28, %v758_v38 }
 0x117   : > { %v831_v33 = vadd.f32 %v823_v41, %v763_v8  ;;  %v825_v22 = vadd.f32 %v817_v43, %v757_v5  ;;  %v827_v59 = vadd.f32 %v819_v1, %v759_v50  ;;  %v828_v60 = vadd.f32 %v820_v37, %v760_v56 }
 0x118   : > { %v829_v42 = vadd.f32 %v821_v30, %v761_v27  ;;  %v830_v21 = vadd.f32 %v822_v18, %v762_v48 }
 0x11b   : > { %v1149_v7 = vpop.eup %1148 }
 0x11c   : > { %v1151_v13 = vpop.eup %1150  ;;  %v892_v6 = vmul.f32 %v1149_v7, %v850_v19  ;;  %v902_v44 = vadd.f32 %v1149_v7, %v834_v14  ;;  %v886_v24 = vmul.f32 %v1149_v7, %v2074_v3  ;;  %v888_v11 = vmul.f32 %v1149_v7, %v2089_v49 }
 0x11d   : > { %v891_v26 = vmul.f32 %v1151_v13, %v848_v57  ;;  %v901_v16 = vadd.f32 %v1151_v13, %v833_v17  ;;  %v885_v12 = vmul.f32 %v1151_v13, %v2076_v55  ;;  %v887_v8 = vmul.f32 %v1151_v13, %v2091_v29 }
 0x11e   : > { %v900_v53 = vadd.f32 %v892_v6, %v832_v10  ;;  %1152 = vrcp.f32 %v902_v44  ;;  %v889_v45 = vmul.f32 %v1151_v13, %v2119_v36  ;;  %v890_v62 = vmul.f32 %v1149_v7, %v2117_v23 }
 0x11f   : > { %v899_v5 = vadd.f32 %v891_v26, %v831_v33  ;;  %1154 = vrcp.f32 %v901_v16  ;;  %v893_v63 = vadd.f32 %v885_v12, %v825_v22  ;;  %v894_v38 = vadd.f32 %v886_v24, %v826_v4 }
 0x120   : > { %v895_v3 = vadd.f32 %v887_v8, %v827_v59  ;;  %v896_v49 = vadd.f32 %v888_v11, %v828_v60  ;;  %v897_v0 = vadd.f32 %v889_v45, %v829_v42  ;;  %v898_v35 = vadd.f32 %v890_v62, %v830_v21 }
 0x12b   : > { %v1153_v55 = vpop.eup %1152 }
 0x12c   : > { %v1155_v29 = vpop.eup %1154  ;;  %v912_v19 = vmul.f32 %v1153_v55, %v900_v53  ;;  %v906_v57 = vmul.f32 %v1153_v55, %v894_v38  ;;  %v908_v36 = vmul.f32 %v1153_v55, %v896_v49  ;;  %v910_v40 = vmul.f32 %v1153_v55, %v898_v35 }
 0x12d   : > { %v911_v23 = vmul.f32 %v1155_v29, %v899_v5  ;;  %v905_v50 = vmul.f32 %v1155_v29, %v893_v63  ;;  %v907_v31 = vmul.f32 %v1155_v29, %v895_v3  ;;  %v909_v47 = vmul.f32 %v1155_v29, %v897_v0 }
 0x12e   : > { %920 = vst.msk [vmem:[%s176_s15 + $0x38] sm:$0xff] %vm210_vm0, %v912_v19  ;;  %914 = vst.msk [vmem:[%s176_s15 + $0x8] sm:$0xff] %vm210_vm0, %v906_v57 }
 0x12f   : > { %916 = vst.msk [vmem:[%s176_s15 + $0x18] sm:$0xff] %vm210_vm0, %v908_v36  ;;  %918 = vst.msk [vmem:[%s176_s15 + $0x28] sm:$0xff] %vm210_vm0, %v910_v40 }
 0x130   : > { %919 = vst.msk [vmem:[%s176_s15 + $0x30] sm:$0xff] %vm210_vm0, %v911_v23  ;;  %913 = vst.msk [vmem:[%s176_s15] sm:$0xff] %vm210_vm0, %v905_v50 }
 0x131   : > { %915 = vst.msk [vmem:[%s176_s15 + $0x10] sm:$0xff] %vm210_vm0, %v907_v31  ;;  %917 = vst.msk [vmem:[%s176_s15 + $0x20] sm:$0xff] %vm210_vm0, %v909_v47 }
 0x132   : > { %1169 = shalt.err (!%p1166_p5)
}
 0x133   : > { %s1170_s28 = scalar_lea.hbm %s2154_s23, 1024  ;;  %s1174_s3 = scalar_lea.hbm %s2213_s2, 2048 }
 0x134   : > { %p1171_p6 = scmp.ne.s32.totalorder %s2154_s23, %s1170_s28  ;;  %p1175_p10 = scmp.lt.s32.totalorder %s2154_s23, %s2213_s2 }
 0x135   : > { %p1176_p11 = scmp.lt.s32.totalorder %s1174_s3, %s1170_s28 }
 0x136   : > { %p1172_p7 = pnand %p1171_p6, %p1294_p4 }
 0x137   : > { %p1177_p12 = por %p1176_p11, %p1175_p10 }
 0x138   : > { %p1173_p9 = pneg %p1172_p7 }
 0x13a   : > { %p1178_p13 = pnand %p1177_p12, %p1173_p9 }
 0x13c   : > { %1181 = shalt.err (!%p1178_p13)
}
 0x13d   : > { %s1237_s6 = smov 128   ;;  %s1238_s7 = smov 8  }
 0x13e   : > { %1047 = dma.vmem_to_hbm [thread:$0]  (%p1294_p4), %s2156_s16, 1024, %s2154_s23, %s2166_s12, %s1237_s6, %s1237_s6, %s1238_s7  }
 0x13f PF: > { %p1053_p0 = scmp.ge.s32.totalorder %s1232_s14, 2  ;;  %s952_s8 = sand.u32 1, %s1212_s9  }
 0x140   : > { %s953_s15 = scalar_lea.sflag [#allocation3], %s952_s8 }
 0x141   : > { %p1050_p1 = pnand %p1053_p0, %p1301_p8 }
 0x143   : > { %p1051_p2 = pneg %p1050_p1 }
 0x145   : > { %1207 = dma.done.wait (%p1051_p2), %s953_s15, 1024  }
 0x146   : > { %1209 = vsyncadd (%p1051_p2), %s953_s15, 4294966272  ;;  %s15_s14 = sadd.s32 1, %s1232_s14   ;;  %s2256_s9 = smov %s1216_s10 }
 0x147   : > { %p12_p3 = scmp.ge.s32.totalorder %s15_s14, 4   ;;  %s2257_s10 = smov %s1220_s11 }
 0x148   : > { %s2258_s11 = smov %s1307_s22  ;;  %s2259_s12 = smov %s1228_s13 }
 0x149   : > { %s2260_s13 = smov %s2262_s17  ;;  %14 = sbr.rel (!%p12_p3) target bundleno = 4 (0x4), region = 67 }
 0x14e   :  { %958 = vsyncpa [#allocation3], 1 }
 0x14f   :  { %960 = vsyncpa [#allocation3 + $0x1], 1 }

</bundles_post_ra>
